<compile_context>
chip_gen: v6e
topology: v6e:2x2x1
jax: 0.10.0
libtpu: 0.0.40
codegen_flags: <defaults>
</compile_context>

<pallas_src>
import functools

import jax
import jax.numpy as jnp
from jax import lax
from jax.experimental import pallas as pl
from jax.experimental.pallas import tpu as pltpu

BN_EPS = 1e-5


def _pick_row_tile(h, w):
    """Row tile (original resolution) and padded row count.

    Targets a matmul M = th*w >= 256 (one full v6e/v7x MXU pass; two 128x128 passes on
    v5e) with th a multiple of 8 so dynamic row-slice starts stay sublane aligned.
    Awkward h is padded up instead of degenerating to th=1.
    """
    if h <= 8 or h * w <= 2048:
        return h, h                                        # single tile, no padding
    th = ((max(1, -(-256 // w)) + 7) // 8) * 8             # ceil(256/w) -> mult of 8
    th = max(8, min(th, ((h + 7) // 8) * 8))
    h_pad = -(-h // th) * th
    return th, h_pad


def _const_block_spec(block_shape, index_map):
    """BlockSpec for grid-constant operands; single-buffered when supported."""
    buffered = getattr(pl, "Buffered", None)
    if buffered is not None:
        try:
            return pl.BlockSpec(block_shape, index_map, pipeline_mode=buffered(1))
        except TypeError:                                   # older JAX: no pipeline_mode
            pass
    return pl.BlockSpec(block_shape, index_map)


def _conv_tile(x_ref, w_ref, row_tile):
    """Fused upsample(x2, nearest) + 3x3 conv for one row tile, all 4 phases at once.

    x_ref : (1, h_pad+2, w+2, Cin)  zero-padded original-resolution input (bf16).
    w_ref : (9*Cin, 4*Cout)         phase-collapsed conv weights (bf16).
    Returns (row_tile*w, 4*Cout) f32; last-axis order is (phase_a, phase_b, Cout).
    """
    _n, _hp, wp2, cin = x_ref.shape
    w = wp2 - 2
    row0 = pl.multiple_of(pl.program_id(1) * row_tile, row_tile)
    xt = x_ref[0, pl.ds(row0, row_tile + 2), :, :]          # (th+2, w+2, Cin)
    # im2col, hoisted: 3 column shifts, then 3 row shifts of the concatenated block
    # (3+3 concats instead of 9); last-axis order stays (dy, dx, Cin).
    xcols = jnp.concatenate([xt[:, dx:dx + w, :] for dx in range(3)], axis=-1)
    patch = jnp.concatenate([xcols[dy:dy + row_tile] for dy in range(3)], axis=-1)
    patch = patch.reshape(row_tile * w, 9 * cin)
    # Single MXU push: K = 9*Cin, N = 4*Cout, bf16 x bf16 -> f32 accumulate.
    return jnp.dot(patch, w_ref[...], preferred_element_type=jnp.float32)


def _tile_stats(acc, row_tile, valid_h, padded):
    """Per-tile (sum, sum-of-squares) over rows; padded rows masked out of the stats."""
    c4 = acc.shape[-1]
    w = acc.shape[0] // row_tile
    acc3 = acc.reshape(row_tile, w, c4)                     # split leading dim only
    if padded:
        row0 = pl.program_id(1) * row_tile
        ridx = lax.broadcasted_iota(jnp.int32, acc3.shape, 0) + row0
        acc3 = jnp.where(ridx < valid_h, acc3, 0.0)
    s = jnp.sum(jnp.sum(acc3, axis=0), axis=0, keepdims=True)           # (1, 4*Cout)
    ss = jnp.sum(jnp.sum(acc3 * acc3, axis=0), axis=0, keepdims=True)   # (1, 4*Cout)
    return jnp.concatenate([s, ss], axis=0).reshape(1, 1, 2, c4)


def _stats_kernel(x_ref, w_ref, stats_ref, *, row_tile, valid_h, padded):
    """Small-Cin path, pass 1: BN batch statistics only (conv recomputed in pass 2)."""
    acc = _conv_tile(x_ref, w_ref, row_tile)
    stats_ref[...] = _tile_stats(acc, row_tile, valid_h, padded)


def _conv_store_stats_kernel(x_ref, w_ref, y_ref, stats_ref, *,
                             row_tile, valid_h, padded):
    """Large-Cin path, pass 1: write the conv output once + BN batch statistics."""
    acc = _conv_tile(x_ref, w_ref, row_tile)
    _b, th, w, c4 = y_ref.shape
    y_ref[...] = acc.reshape(1, th, w, c4)
    stats_ref[...] = _tile_stats(acc, row_tile, valid_h, padded)


def _conv_bn_relu_kernel(x_ref, w_ref, scale_ref, shift_ref, o_ref, *, row_tile):
    """Small-Cin path, pass 2: recompute conv tile, apply folded BN + ReLU."""
    acc = _conv_tile(x_ref, w_ref, row_tile)
    y = jnp.maximum(acc * scale_ref[...] + shift_ref[...], 0.0)
    _b, th, w, c4 = o_ref.shape
    o_ref[...] = y.reshape(1, th, w, c4)


def up_conv_pallas(x_nchw, w_oihw, bias, gamma, beta, *,
                   mxu_dtype=jnp.bfloat16, store_conv_min_cin=128):
    """x_nchw: (N, Cin, h, w) f32.  Returns (N, Cout, 2h, 2w) f32 (PyTorch layout)."""
    N, Cin, h, w = x_nchw.shape
    Cout = w_oihw.shape[0]
    H, W = 2 * h, 2 * w
    c4 = 4 * Cout
    # Conv bias is cancelled exactly by training-mode BatchNorm (mean subtraction).
    del bias

    th, h_pad = _pick_row_tile(h, w)
    R = h_pad // th
    padded = h_pad != h

    # --- original-resolution glue (1/4 the size of the output) ------------------
    x = jnp.transpose(x_nchw, (0, 2, 3, 1)).astype(mxu_dtype)        # NHWC, MXU dtype
    xpad = jnp.pad(x, ((0, 0), (1, 1 + (h_pad - h)), (1, 1), (0, 0)))

    # Phase-collapsed weights: output row-phase a maps the 3 kernel rows onto
    # source-row offsets {0,1,1} (a=0) / {1,1,2} (a=1) of the padded input; same for
    # columns with phase b.  Upsample+conv thus becomes 4 sub-convs sharing one 3x3
    # window of the original-resolution input -> one matmul with N = 4*Cout.
    rmap = jnp.array([[[1, 0, 0], [0, 1, 1], [0, 0, 0]],              # a = 0: [a, dy, t]
                      [[0, 0, 0], [1, 1, 0], [0, 0, 1]]],             # a = 1
                     dtype=jnp.float32)
    w_eff = jnp.einsum("ayt,bxu,octu->yxcabo", rmap, rmap,
                       w_oihw.astype(jnp.float32))                    # (3,3,Cin,2,2,Cout)
    w_mat = w_eff.reshape(9 * Cin, c4).astype(mxu_dtype)

    # --- VMEM budget derived from actual block sizes (v7x has only 64 MiB) -------
    itemsize = jnp.dtype(mxu_dtype).itemsize
    x_blk = (h_pad + 2) * (w + 2) * Cin * itemsize
    w_blk = 9 * Cin * c4 * itemsize
    y_blk = th * w * c4 * 4
    scratch = th * w * (9 * Cin * itemsize + c4 * 4)                  # im2col + acc
    vmem_limit = int(min(max(2 * x_blk + 2 * w_blk + 2 * y_blk + scratch + (8 << 20),
                             32 << 20), 128 << 20))
    cparams = pltpu.CompilerParams(
        dimension_semantics=("parallel", "parallel"),
        vmem_limit_bytes=vmem_limit)

    flops = 2 * N * h_pad * w * (9 * Cin) * c4
    in_bytes = int(xpad.size) * itemsize + int(w_mat.size) * itemsize

    x_spec = pl.BlockSpec((1, h_pad + 2, w + 2, Cin), lambda n, r: (n, 0, 0, 0))
    w_spec = _const_block_spec((9 * Cin, c4), lambda n, r: (0, 0))
    stats_spec = pl.BlockSpec((1, 1, 2, c4), lambda n, r: (n, r, 0, 0))
    y_spec = pl.BlockSpec((1, th, w, c4), lambda n, r: (n, r, 0, 0))
    stats_shape = jax.ShapeDtypeStruct((N, R, 2, c4), jnp.float32)
    y_shape = jax.ShapeDtypeStruct((N, h_pad, w, c4), jnp.float32)

    store_conv = Cin >= store_conv_min_cin
    if store_conv:
        # --- pass 1 (large Cin): conv output + stats in one sweep ----------------
        y4, stats = pl.pallas_call(
            functools.partial(_conv_store_stats_kernel, row_tile=th,
                              valid_h=h, padded=padded),
            out_shape=(y_shape, stats_shape),
            grid_spec=pltpu.PrefetchScalarGridSpec(
                num_scalar_prefetch=0, grid=(N, R),
                in_specs=[x_spec, w_spec],
                out_specs=(y_spec, stats_spec)),
            compiler_params=cparams,
            cost_estimate=pl.CostEstimate(
                flops=flops, transcendentals=0,
                bytes_accessed=in_bytes + int(N * h_pad * w * c4 * 4)),
        )(xpad, w_mat)
    else:
        # --- pass 1 (small Cin): stats only; conv recomputed in pass 2 -----------
        stats = pl.pallas_call(
            functools.partial(_stats_kernel, row_tile=th, valid_h=h, padded=padded),
            out_shape=stats_shape,
            grid_spec=pltpu.PrefetchScalarGridSpec(
                num_scalar_prefetch=0, grid=(N, R),
                in_specs=[x_spec, w_spec],
                out_specs=stats_spec),
            compiler_params=cparams,
            cost_estimate=pl.CostEstimate(
                flops=flops, transcendentals=0,
                bytes_accessed=in_bytes + int(N * R * 2 * c4 * 4)),
        )(xpad, w_mat)

    # --- fold BN (batch stats, biased variance) into per-channel scale/shift ----
    cnt = jnp.float32(N * H * W)                          # padded rows masked in-kernel
    s1 = stats[:, :, 0, :].reshape(-1, Cout).sum(axis=0)
    s2 = stats[:, :, 1, :].reshape(-1, Cout).sum(axis=0)
    mean = s1 / cnt
    var = jnp.maximum(s2 / cnt - mean * mean, 0.0)
    scale = gamma * lax.rsqrt(var + BN_EPS)
    shift = beta - mean * scale

    if store_conv:
        # Memory-bound epilogue: BN + ReLU fused (by XLA) into the phase interleave.
        y = y4[:, :h].reshape(N, h, w, 2, 2, Cout)
        y = jnp.maximum(y * scale + shift, 0.0)
    else:
        # --- pass 2 (small Cin): recompute conv + folded BN + ReLU ---------------
        scale4 = jnp.tile(scale, 4).reshape(1, c4)
        shift4 = jnp.tile(shift, 4).reshape(1, c4)
        y4 = pl.pallas_call(
            functools.partial(_conv_bn_relu_kernel, row_tile=th),
            out_shape=y_shape,
            grid_spec=pltpu.PrefetchScalarGridSpec(
                num_scalar_prefetch=0, grid=(N, R),
                in_specs=[x_spec, w_spec,
                          _const_block_spec((1, c4), lambda n, r: (0, 0)),
                          _const_block_spec((1, c4), lambda n, r: (0, 0))],
                out_specs=y_spec),
            compiler_params=cparams,
            cost_estimate=pl.CostEstimate(
                flops=flops, transcendentals=0,
                bytes_accessed=in_bytes + int(N * h_pad * w * c4 * 4)),
        )(xpad, w_mat, scale4, shift4)
        y = y4[:, :h].reshape(N, h, w, 2, 2, Cout)

    # Interleave the 4 phases back to NCHW (module-faithful interface).  One XLA
    # transpose is unavoidable for an NCHW result (channels live on lanes in-kernel);
    # the large-Cin BN+ReLU epilogue fuses into it.
    y = jnp.transpose(y, (0, 5, 1, 3, 2, 4)).reshape(N, Cout, H, W)
    return y


def up_conv_reference(x_nchw, w_oihw, bias, gamma, beta):
    """Pure-JAX reference matching PyTorch up_conv.forward (training-mode BN)."""
    x = jnp.repeat(jnp.repeat(x_nchw, 2, axis=2), 2, axis=3)          # nearest x2, NCHW
    y = lax.conv_general_dilated(
        x, w_oihw, window_strides=(1, 1), padding=((1, 1), (1, 1)),
        dimension_numbers=("NCHW", "OIHW", "NCHW"))
    y = y + bias.reshape(1, -1, 1, 1)
    mean = jnp.mean(y, axis=(0, 2, 3), keepdims=True)
    var = jnp.mean((y - mean) ** 2, axis=(0, 2, 3), keepdims=True)
    y = (y - mean) * lax.rsqrt(var + BN_EPS)
    y = y * gamma.reshape(1, -1, 1, 1) + beta.reshape(1, -1, 1, 1)
    return jnp.maximum(y, 0.0)


def _run_case(key, N, Cin, Cout, h, w, atol=5e-2, rtol=5e-2):
    k1, k2, k3, k4, k5 = jax.random.split(key, 5)
    x = jax.random.normal(k1, (N, Cin, h, w), dtype=jnp.float32)
    fan_in = Cin * 9
    w_conv = jax.random.normal(k2, (Cout, Cin, 3, 3), jnp.float32) / jnp.sqrt(fan_in)
    b_conv = 0.1 * jax.random.normal(k3, (Cout,), jnp.float32)
    gamma = 1.0 + 0.1 * jax.random.normal(k4, (Cout,), jnp.float32)
    beta = 0.1 * jax.random.normal(k5, (Cout,), jnp.float32)

    out = jax.block_until_ready(jax.jit(up_conv_pallas)(x, w_conv, b_conv, gamma, beta))
    ref = up_conv_reference(x, w_conv, b_conv, gamma, beta)

    assert out.shape == (N, Cout, 2 * h, 2 * w), out.shape
    err = float(jnp.max(jnp.abs(out - ref)))
    assert jnp.allclose(out, ref, atol=atol, rtol=rtol), err


if __name__ == "__main__":
    keys = jax.random.split(jax.random.PRNGKey(0), 3)
    # Main case: small Cin path (recompute), single row tile per batch element.
    _run_case(keys[0], N=2, Cin=4, Cout=8, h=16, w=16)
    # Multi-row-tile + padded rows (h=36 -> h_pad=40) exercising the stats mask.
    _run_case(keys[1], N=1, Cin=4, Cout=8, h=36, w=64)
    # Large-Cin path: conv output stored once, XLA-fused BN+ReLU+interleave epilogue.
    _run_case(keys[2], N=1, Cin=128, Cout=16, h=8, w=8)
    print("KERNEL_OK")
</pallas_src>

<mosaic_0001>
module attributes {stable_mosaic.version = 11 : i64} {
  func.func @_stats_kernel(%arg0: i32, %arg1: i32, %arg2: memref<1x18x18x4xbf16, #tpu.memory_space<vmem>>, %arg3: memref<36x32xbf16, #tpu.memory_space<vmem>>, %arg4: memref<1x1x2x32xf32, #tpu.memory_space<vmem>>) attributes {dimension_semantics = [#tpu.dimension_semantics<parallel>, #tpu.dimension_semantics<parallel>], iteration_bounds = array<i64: 2, 1>, scalar_prefetch = 0 : i64, scratch_operands = 0 : i64, tpu.core_type = #tpu.core_type<tc>, window_params = [{transform_indices = @transform_0, window_bounds = array<i64: 1, 18, 18, 4>}, {pipeline_mode = #tpu.pipeline_mode<synchronous>, transform_indices = @transform_1, window_bounds = array<i64: 36, 32>}, {transform_indices = @transform_2, window_bounds = array<i64: 1, 1, 2, 32>}]} {
    %c16_i32 = arith.constant 16 : i32
    %0 = arith.muli %arg1, %c16_i32 : i32
    %1 = tpu.assume_multiple %0, 16 : i32
    %c0 = arith.constant 0 : index
    %2 = arith.index_cast %1 : i32 to index
    %c0_0 = arith.constant 0 : index
    %c0_1 = arith.constant 0 : index
    %3 = vector.load %arg2[%c0, %2, %c0_0, %c0_1] : memref<1x18x18x4xbf16, #tpu.memory_space<vmem>>, vector<1x18x18x4xbf16>
    %4 = vector.shape_cast %3 : vector<1x18x18x4xbf16> to vector<18x18x4xbf16>
    %5 = vector.extract_strided_slice %4 {offsets = [0, 0, 0], sizes = [18, 16, 4], strides = [1, 1, 1]} : vector<18x18x4xbf16> to vector<18x16x4xbf16>
    %6 = vector.extract_strided_slice %4 {offsets = [0, 1, 0], sizes = [18, 16, 4], strides = [1, 1, 1]} : vector<18x18x4xbf16> to vector<18x16x4xbf16>
    %7 = vector.extract_strided_slice %4 {offsets = [0, 2, 0], sizes = [18, 16, 4], strides = [1, 1, 1]} : vector<18x18x4xbf16> to vector<18x16x4xbf16>
    %8 = tpu.concatenate %5, %6, %7 in 2 : vector<18x16x4xbf16>, vector<18x16x4xbf16>, vector<18x16x4xbf16> -> vector<18x16x12xbf16>
    %9 = vector.extract_strided_slice %8 {offsets = [0, 0, 0], sizes = [16, 16, 12], strides = [1, 1, 1]} : vector<18x16x12xbf16> to vector<16x16x12xbf16>
    %10 = vector.extract_strided_slice %8 {offsets = [1, 0, 0], sizes = [16, 16, 12], strides = [1, 1, 1]} : vector<18x16x12xbf16> to vector<16x16x12xbf16>
    %11 = vector.extract_strided_slice %8 {offsets = [2, 0, 0], sizes = [16, 16, 12], strides = [1, 1, 1]} : vector<18x16x12xbf16> to vector<16x16x12xbf16>
    %12 = tpu.concatenate %9, %10, %11 in 2 : vector<16x16x12xbf16>, vector<16x16x12xbf16>, vector<16x16x12xbf16> -> vector<16x16x36xbf16>
    %13 = vector.shape_cast %12 : vector<16x16x36xbf16> to vector<256x36xbf16>
    %c0_2 = arith.constant 0 : index
    %c0_3 = arith.constant 0 : index
    %14 = vector.load %arg3[%c0_2, %c0_3] : memref<36x32xbf16, #tpu.memory_space<vmem>>, vector<36x32xbf16>
    %cst = arith.constant dense<0.000000e+00> : vector<256x32xf32>
    %15 = tpu.matmul %13, %14, %cst {dimension_numbers = #tpu.dot_dimension_numbers<[1], [0], [0], [1], [0, 0, 1, 1], [], []>} : vector<256x36xbf16>, vector<36x32xbf16>, vector<256x32xf32> -> vector<256x32xf32>
    %16 = vector.shape_cast %15 : vector<256x32xf32> to vector<16x16x32xf32>
    %cst_4 = arith.constant dense<0.000000e+00> : vector<16x32xf32>
    %17 = vector.multi_reduction <add>, %16, %cst_4 [0] : vector<16x16x32xf32> to vector<16x32xf32>
    %cst_5 = arith.constant dense<0.000000e+00> : vector<32xf32>
    %18 = vector.multi_reduction <add>, %17, %cst_5 [0] : vector<16x32xf32> to vector<32xf32>
    %19 = vector.shape_cast %18 : vector<32xf32> to vector<1x32xf32>
    %20 = arith.mulf %16, %16 : vector<16x16x32xf32>
    %cst_6 = arith.constant dense<0.000000e+00> : vector<16x32xf32>
    %21 = vector.multi_reduction <add>, %20, %cst_6 [0] : vector<16x16x32xf32> to vector<16x32xf32>
    %cst_7 = arith.constant dense<0.000000e+00> : vector<32xf32>
    %22 = vector.multi_reduction <add>, %21, %cst_7 [0] : vector<16x32xf32> to vector<32xf32>
    %23 = vector.shape_cast %22 : vector<32xf32> to vector<1x32xf32>
    %24 = tpu.concatenate %19, %23 in 0 : vector<1x32xf32>, vector<1x32xf32> -> vector<2x32xf32>
    %25 = vector.shape_cast %24 : vector<2x32xf32> to vector<1x1x2x32xf32>
    %c0_8 = arith.constant 0 : index
    %c0_9 = arith.constant 0 : index
    %c0_10 = arith.constant 0 : index
    %c0_11 = arith.constant 0 : index
    %26 = vector.load %arg4[%c0_8, %c0_9, %c0_10, %c0_11] : memref<1x1x2x32xf32, #tpu.memory_space<vmem>>, vector<1x1x2x32xf32>
    tpu.vector_store %arg4[%c0_8, %c0_9, %c0_10, %c0_11], %25 {strides = array<i32>} : memref<1x1x2x32xf32, #tpu.memory_space<vmem>>, vector<1x1x2x32xf32>,
    return
  }
  func.func @transform_0(%arg0: i32, %arg1: i32) -> (i32, i32, i32, i32) {
    %c0_i32 = arith.constant 0 : i32
    %c0_i32_0 = arith.constant 0 : i32
    %c0_i32_1 = arith.constant 0 : i32
    %c0_i32_2 = arith.constant 0 : i32
    return %arg0, %c0_i32, %c0_i32_0, %c0_i32_1 : i32, i32, i32, i32
  }
  func.func @transform_1(%arg0: i32, %arg1: i32) -> (i32, i32) {
    %c0_i32 = arith.constant 0 : i32
    %c0_i32_0 = arith.constant 0 : i32
    %c0_i32_1 = arith.constant 0 : i32
    return %c0_i32, %c0_i32_0 : i32, i32
  }
  func.func @transform_2(%arg0: i32, %arg1: i32) -> (i32, i32, i32, i32) {
    %c0_i32 = arith.constant 0 : i32
    %c0_i32_0 = arith.constant 0 : i32
    %c0_i32_1 = arith.constant 0 : i32
    return %arg0, %arg1, %c0_i32, %c0_i32_0 : i32, i32, i32, i32
  }
}

module attributes {stable_mosaic.version = 11 : i64} {
  func.func @_conv_bn_relu_kernel(%arg0: i32, %arg1: i32, %arg2: memref<1x18x18x4xbf16, #tpu.memory_space<vmem>>, %arg3: memref<36x32xbf16, #tpu.memory_space<vmem>>, %arg4: memref<1x32xf32, #tpu.memory_space<vmem>>, %arg5: memref<1x32xf32, #tpu.memory_space<vmem>>, %arg6: memref<1x16x16x32xf32, #tpu.memory_space<vmem>>) attributes {dimension_semantics = [#tpu.dimension_semantics<parallel>, #tpu.dimension_semantics<parallel>], iteration_bounds = array<i64: 2, 1>, scalar_prefetch = 0 : i64, scratch_operands = 0 : i64, tpu.core_type = #tpu.core_type<tc>, window_params = [{transform_indices = @transform_0, window_bounds = array<i64: 1, 18, 18, 4>}, {pipeline_mode = #tpu.pipeline_mode<synchronous>, transform_indices = @transform_1, window_bounds = array<i64: 36, 32>}, {pipeline_mode = #tpu.pipeline_mode<synchronous>, transform_indices = @transform_2, window_bounds = array<i64: 1, 32>}, {pipeline_mode = #tpu.pipeline_mode<synchronous>, transform_indices = @transform_3, window_bounds = array<i64: 1, 32>}, {transform_indices = @transform_4, window_bounds = array<i64: 1, 16, 16, 32>}]} {
    %c16_i32 = arith.constant 16 : i32
    %0 = arith.muli %arg1, %c16_i32 : i32
    %1 = tpu.assume_multiple %0, 16 : i32
    %c0 = arith.constant 0 : index
    %2 = arith.index_cast %1 : i32 to index
    %c0_0 = arith.constant 0 : index
    %c0_1 = arith.constant 0 : index
    %3 = vector.load %arg2[%c0, %2, %c0_0, %c0_1] : memref<1x18x18x4xbf16, #tpu.memory_space<vmem>>, vector<1x18x18x4xbf16>
    %4 = vector.shape_cast %3 : vector<1x18x18x4xbf16> to vector<18x18x4xbf16>
    %5 = vector.extract_strided_slice %4 {offsets = [0, 0, 0], sizes = [18, 16, 4], strides = [1, 1, 1]} : vector<18x18x4xbf16> to vector<18x16x4xbf16>
    %6 = vector.extract_strided_slice %4 {offsets = [0, 1, 0], sizes = [18, 16, 4], strides = [1, 1, 1]} : vector<18x18x4xbf16> to vector<18x16x4xbf16>
    %7 = vector.extract_strided_slice %4 {offsets = [0, 2, 0], sizes = [18, 16, 4], strides = [1, 1, 1]} : vector<18x18x4xbf16> to vector<18x16x4xbf16>
    %8 = tpu.concatenate %5, %6, %7 in 2 : vector<18x16x4xbf16>, vector<18x16x4xbf16>, vector<18x16x4xbf16> -> vector<18x16x12xbf16>
    %9 = vector.extract_strided_slice %8 {offsets = [0, 0, 0], sizes = [16, 16, 12], strides = [1, 1, 1]} : vector<18x16x12xbf16> to vector<16x16x12xbf16>
    %10 = vector.extract_strided_slice %8 {offsets = [1, 0, 0], sizes = [16, 16, 12], strides = [1, 1, 1]} : vector<18x16x12xbf16> to vector<16x16x12xbf16>
    %11 = vector.extract_strided_slice %8 {offsets = [2, 0, 0], sizes = [16, 16, 12], strides = [1, 1, 1]} : vector<18x16x12xbf16> to vector<16x16x12xbf16>
    %12 = tpu.concatenate %9, %10, %11 in 2 : vector<16x16x12xbf16>, vector<16x16x12xbf16>, vector<16x16x12xbf16> -> vector<16x16x36xbf16>
    %13 = vector.shape_cast %12 : vector<16x16x36xbf16> to vector<256x36xbf16>
    %c0_2 = arith.constant 0 : index
    %c0_3 = arith.constant 0 : index
    %14 = vector.load %arg3[%c0_2, %c0_3] : memref<36x32xbf16, #tpu.memory_space<vmem>>, vector<36x32xbf16>
    %cst = arith.constant dense<0.000000e+00> : vector<256x32xf32>
    %15 = tpu.matmul %13, %14, %cst {dimension_numbers = #tpu.dot_dimension_numbers<[1], [0], [0], [1], [0, 0, 1, 1], [], []>} : vector<256x36xbf16>, vector<36x32xbf16>, vector<256x32xf32> -> vector<256x32xf32>
    %c0_4 = arith.constant 0 : index
    %c0_5 = arith.constant 0 : index
    %16 = vector.load %arg4[%c0_4, %c0_5] : memref<1x32xf32, #tpu.memory_space<vmem>>, vector<1x32xf32>
    %17 = vector.broadcast %16 : vector<1x32xf32> to vector<256x32xf32>
    %18 = arith.mulf %15, %17 : vector<256x32xf32>
    %c0_6 = arith.constant 0 : index
    %c0_7 = arith.constant 0 : index
    %19 = vector.load %arg5[%c0_6, %c0_7] : memref<1x32xf32, #tpu.memory_space<vmem>>, vector<1x32xf32>
    %20 = vector.broadcast %19 : vector<1x32xf32> to vector<256x32xf32>
    %21 = arith.addf %18, %20 : vector<256x32xf32>
    %cst_8 = arith.constant 0.000000e+00 : f32
    %22 = vector.broadcast %cst_8 : f32 to vector<256x32xf32>
    %23 = arith.maximumf %21, %22 : vector<256x32xf32>
    %24 = vector.shape_cast %23 : vector<256x32xf32> to vector<1x16x16x32xf32>
    %c0_9 = arith.constant 0 : index
    %c0_10 = arith.constant 0 : index
    %c0_11 = arith.constant 0 : index
    %c0_12 = arith.constant 0 : index
    %25 = vector.load %arg6[%c0_9, %c0_10, %c0_11, %c0_12] : memref<1x16x16x32xf32, #tpu.memory_space<vmem>>, vector<1x16x16x32xf32>
    tpu.vector_store %arg6[%c0_9, %c0_10, %c0_11, %c0_12], %24 {strides = array<i32>} : memref<1x16x16x32xf32, #tpu.memory_space<vmem>>, vector<1x16x16x32xf32>,
    return
  }
  func.func @transform_0(%arg0: i32, %arg1: i32) -> (i32, i32, i32, i32) {
    %c0_i32 = arith.constant 0 : i32
    %c0_i32_0 = arith.constant 0 : i32
    %c0_i32_1 = arith.constant 0 : i32
    %c0_i32_2 = arith.constant 0 : i32
    return %arg0, %c0_i32, %c0_i32_0, %c0_i32_1 : i32, i32, i32, i32
  }
  func.func @transform_1(%arg0: i32, %arg1: i32) -> (i32, i32) {
    %c0_i32 = arith.constant 0 : i32
    %c0_i32_0 = arith.constant 0 : i32
    %c0_i32_1 = arith.constant 0 : i32
    return %c0_i32, %c0_i32_0 : i32, i32
  }
  func.func @transform_2(%arg0: i32, %arg1: i32) -> (i32, i32) {
    %c0_i32 = arith.constant 0 : i32
    %c0_i32_0 = arith.constant 0 : i32
    %c0_i32_1 = arith.constant 0 : i32
    return %c0_i32, %c0_i32_0 : i32, i32
  }
  func.func @transform_3(%arg0: i32, %arg1: i32) -> (i32, i32) {
    %c0_i32 = arith.constant 0 : i32
    %c0_i32_0 = arith.constant 0 : i32
    %c0_i32_1 = arith.constant 0 : i32
    return %c0_i32, %c0_i32_0 : i32, i32
  }
  func.func @transform_4(%arg0: i32, %arg1: i32) -> (i32, i32, i32, i32) {
    %c0_i32 = arith.constant 0 : i32
    %c0_i32_0 = arith.constant 0 : i32
    %c0_i32_1 = arith.constant 0 : i32
    return %arg0, %arg1, %c0_i32, %c0_i32_0 : i32, i32, i32, i32
  }
}

</mosaic_0001>

<bundles_post_ra>
// kernel: squeeze.2
= control target key start
LH: loop header
LB: loop body
LE: loop exit
PB: predicated region body
PF: predicated region fallthrough
CT: control target
= control target key end

     0   :  { %s35_s8 = smov 104   ;;  %vm8_vm0 = vcmask 64512   ;;  %s36_s11 = smov 112   ;;  %s62_s0 = inlined_call_operand.vmem [shape: f32[2,32], index: 0, kind: input, shape index: {}]   ;;  %s63_s1 = inlined_call_operand.vmem [shape: f32[8,8], index: 1, kind: output, shape index: {}]  }
   0x1   :  { %v5_v0 = vld [vmem:[%s62_s0] sm:$0x3]  ;;  %s34_s0 = smov 120  }
   0x2   :  { %6 = vst [vmem:[#allocation0] sm:$0x3] %v5_v0 }
   0x9   :  { %v10_v1 = vld [vmem:[#allocation0] sm:$0x3]  }
   0xa   :  { %v22_v2 = vld [vmem:[#allocation0] sm:$0x3]   ;;  %11 = vrot.lane.b32.xlu0 %v10_v1, %s34_s0 }
   0xb   :  { %23 = vrot.lane.b32.xlu1 %v22_v2, %s35_s8  ;;  %v7_v3 = vld [vmem:[#allocation0] sm:$0x3]  }
   0xc   :  { %v16_v4 = vld [vmem:[#allocation0] sm:$0x3]   ;;  %9 = vst.msk [vmem:[%s63_s1] ss:$4 sm:$0x3] %vm8_vm0, %v7_v3  }
   0xe   :  { %17 = vrot.lane.b32.xlu0 %v16_v4, %s36_s11 }
  0x7c   :  { %v12_v5 = vpop.permute.xlu0 %11  }
  0x7d   :  { %v24_v6 = vpop.permute.xlu1 %23   ;;  %28 = vst.msk [vmem:[%s63_s1 + $0x1] ss:$4 sm:$0x3] %vm8_vm0, %v12_v5  }
  0x7e   :  { %30 = vst.msk [vmem:[%s63_s1 + $0x3] ss:$4 sm:$0x3] %vm8_vm0, %v24_v6  }
  0x80   :  { %v18_v7 = vpop.permute.xlu0 %17  }
  0x81   :  { %29 = vst.msk [vmem:[%s63_s1 + $0x2] ss:$4 sm:$0x3] %vm8_vm0, %v18_v7  }

// kernel: tile.18
= control target key start
LH: loop header
LB: loop body
LE: loop exit
PB: predicated region body
PF: predicated region fallthrough
CT: control target
= control target key end

     0   :  { %s22_s0 = inlined_call_operand.vmem [shape: f32[8], index: 0, kind: input, shape index: {}]   ;;  %s23_s1 = inlined_call_operand.vmem [shape: f32[4,8], index: 1, kind: output, shape index: {}]  }
   0x1   :  { %v4_v0 = vld [vmem:[%s22_s0] ss:$0 sm:$0xff] }
   0x2   :  { %5 = vst [vmem:[%s23_s1] sm:$0xf] %v4_v0 }

// kernel: tile.19
= control target key start
LH: loop header
LB: loop body
LE: loop exit
PB: predicated region body
PF: predicated region fallthrough
CT: control target
= control target key end

     0   :  { %vm8_vm0 = vcmask 64512   ;;  %s40_s8 = smov 8   ;;  %s41_s9 = smov 16   ;;  %vm14_vm1 = vcmask 261312   ;;  %vm20_vm2 = vcmask 195712   ;;  %vm26_vm3 = vcmask 130112   ;;  %s58_s0 = inlined_call_operand.vmem [shape: f32[4,8], index: 0, kind: input, shape index: {}]   ;;  %s59_s1 = inlined_call_operand.vmem [shape: f32[1,32], index: 1, kind: output, shape index: {}]  }
   0x1   :  { %v5_v0 = vld [vmem:[%s58_s0] sm:$0xf]  ;;  %s39_s0 = smov 24  }
   0x2   :  { %6 = vst [vmem:[#allocation1] sm:$0xf] %v5_v0 }
   0x9   :  { %v11_v1 = vld [vmem:[#allocation1 + $0x3] sm:$0x1]   ;;  %v23_v2 = vld [vmem:[#allocation1 + $0x1] sm:$0x1]   ;;  %v7_v3 = vld [vmem:[#allocation1] sm:$0x1]  }
   0xa   :  { %12 = vrot.lane.b32.xlu0 %v11_v1, %s39_s0  ;;  %24 = vrot.lane.b32.xlu1 %v23_v2, %s40_s8  ;;  %v17_v4 = vld [vmem:[#allocation1 + $0x2] sm:$0x1]   ;;  %9 = vst.msk [vmem:[#allocation0] sm:$0x1] %vm8_vm0, %v7_v3  }
   0xe   :  { %18 = vrot.lane.b32.xlu0 %v17_v4, %s41_s9 }
  0x7c   :  { %v13_v5 = vpop.permute.xlu0 %12   ;;  %v25_v6 = vpop.permute.xlu1 %24  }
  0x7d   :  { %15 = vst.msk [vmem:[#allocation0] sm:$0x1] %vm14_vm1, %v13_v5  }
  0x80   :  { %v19_v7 = vpop.permute.xlu0 %18  }
  0x81   :  { %21 = vst.msk [vmem:[#allocation0] sm:$0x1] %vm20_vm2, %v19_v7  }
  0x82   :  { %27 = vst.msk [vmem:[#allocation0] sm:$0x1] %vm26_vm3, %v25_v6  }
  0x89   :  { %v32_v8 = vld [vmem:[#allocation0] sm:$0x1] }
  0x8a   :  { %35 = vst [vmem:[%s59_s1] sm:$0x1] %v32_v8 }

// kernel: up_conv_pallas.3
= control target key start
LH: loop header
LB: loop body
LE: loop exit
PB: predicated region body
PF: predicated region fallthrough
CT: control target
= control target key end

     0   :  { %s1695_s15 = smov 0   ;;  %s1697_s16 = smov 0   ;;  %s2312_s0 = inlined_call_operand.vmem [shape: bf16[2,18,18,4], index: 0, kind: input, shape index: {}]   ;;  %s2313_s1 = inlined_call_operand.vmem [shape: bf16[36,32], index: 1, kind: input, shape index: {}]   ;;  %s2314_s2 = inlined_call_operand.vmem [shape: f32[1,32], index: 2, kind: input, shape index: {}]   ;;  %s2315_s3 = inlined_call_operand.vmem [shape: f32[1,32], index: 3, kind: input, shape index: {}]   ;;  %s2316_s4 = inlined_call_operand.vmem [shape: f32[2,16,16,32], index: 4, kind: output, shape index: {}]  }
   0x1   :  { %s1699_s17 = smov 0  }
   0x2 LB: > { %s26_s18 = sadd.s32 1, %s1660_s16  ;;  %p1445_p0 = scmp.ge.s32.totalorder %s1664_s17, 1  ;;  %s1664_s17 = sphi %s1699_s17, %s14_s17   ;;  %s1660_s16 = sphi %s1697_s16, %s2318_s16   ;;  %s1656_s15 = sphi %s1695_s15, %s2317_s15  }
   0x3   : > { %p28_p1 = scmp.ge.s32.totalorder %s26_s18, 2  ;;  %p176_p2 = scmp.lt.s32.totalorder %s1664_s17, 3 }
   0x5   : > { %s2320_s18 = smov (%p28_p1, %s26_s18), 0  ;;  %p177_p3 = pnand %p1445_p0, %p176_p2 }
   0x6   : > { %p207_p4 = scmp.lt.s32.totalorder (!%p177_p3), %s1656_s15, 1  ;;  %s1666_s23 = smov (!%p177_p3), 8  }
   0x7   : > { %180 = sbr.rel (%p177_p3) target bundleno = 532 (0x214), region = 36  ;;  %s1667_s24 = smov (!%p177_p3), 4  }
   0x8   : > { %s1668_s5 = smov (!%p177_p3), 12   ;;  %s1669_s6 = smov (!%p177_p3), 24  }
   0xc   : > { %s2322_s15 = smov (!%p207_p4, %s1656_s15), 1  ;;  %vm679_vm0 = vcmask 1046528   ;;  %vm426_vm1 = vsmask.f32 7424  ;;  %vm1044_vm2 = vcmask 1041408   ;;  %vm770_vm3 = vcmask 31744  }
   0xd   : > { %s1574_s19 = smul.u32 216, %s2322_s15  ;;  %vm807_vm4 = vcmask 64512   ;;  %vm925_vm5 = vcmask 97280   ;;  %vm958_vm6 = vcmask 195584   ;;  %vm1011_vm7 = vcmask 293888   ;;  %s1508_s11 = sshll.u32 %s2322_s15, 8 }
   0xe   : > { %s2176_s14 = scalar_lea.vmem %s2316_s4, %s1508_s11  ;;  %vm1319_vm8 = vcmask 261120  }
   0xf   : > { %s1719_s22 = scalar_lea.vmem %s2312_s0, %s1574_s19 }
  0x10   : > { %v1722_v0 = vld [vmem:[%s1719_s22 + $0x6c] sm:$0xff]   ;;  %v1604_v1 = vld [vmem:[%s1719_s22 + $0x74] ss:$0 sps:$4 sm:$0x11]   ;;  %v1731_v6 = vld [vmem:[%s1719_s22 + $0x78] sm:$0xff]  }
  0x11   : > { %v1726_v2 = vld [vmem:[%s1719_s22 + $0xc] sm:$0xff]   ;;  %v707_v3 = vrot.slane %v1722_v0, 1  ;;  %v708_v4 = vrot.slane %v1604_v1, 1  ;;  %v1606_v5 = vld [vmem:[%s1719_s22 + $0x14] ss:$0 sps:$4 sm:$0x11]  }
  0x12   : > { %v683_v7 = vrot.slane %v1726_v2, 1  ;;  %v1735_v8 = vld [vmem:[%s1719_s22 + $0x18] sm:$0xff]   ;;  %v684_v10 = vrot.slane %v1606_v5, 1  ;;  %v1608_v11 = vld [vmem:[%s1719_s22 + $0x80] ss:$0 sps:$4 sm:$0x11]  }
  0x13   : > { %v709_v9 = vsel %vm679_vm0, %v707_v3, %v708_v4  ;;  %v710_v12 = vrot.slane %v1731_v6, 1  ;;  %v686_v13 = vrot.slane %v1735_v8, 1  ;;  %v711_v15 = vrot.slane %v1608_v11, 1  ;;  %v1610_v16 = vld [vmem:[%s1719_s22 + $0x20] ss:$0 sps:$4 sm:$0x11]  }
  0x14   : > { %752 = vrot.lane.b32.xlu1 %v709_v9, %s1666_s23  ;;  %v685_v14 = vsel %vm679_vm0, %v683_v7, %v684_v10  ;;  %v452_v17 = vshrl.u32 %v1735_v8, 16  ;;  %v454_v18 = vshll.u32 %v1735_v8, 16  ;;  %v440_v19 = vshrl.u32 %v1726_v2, 16  ;;  %v1751_v25 = vld [vmem:[%s1719_s22 + $0x84] sm:$0xff]   ;;  %v1770_v49 = vld [vmem:[%s1719_s22 + $0x90] sm:$0xff]   ;;  %v1782_v63 = vld [vmem:[%s1719_s22 + $0x9c] sm:$0xff]  }
  0x15   : > { %736 = vrot.lane.b32.xlu0 %v685_v14, %s1666_s23  ;;  %v442_v20 = vshll.u32 %v1726_v2, 16  ;;  %v712_v21 = vsel %vm679_vm0, %v710_v12, %v711_v15  ;;  %v687_v22 = vrot.slane %v1610_v16, 1  ;;  %v459_v23 = vshll.u32 %v1610_v16, 16  ;;  %v1612_v34 = vld [vmem:[%s1719_s22 + $0x8c] ss:$0 sps:$4 sm:$0x11]  }
  0x16   : > { %v447_v24 = vshll.u32 %v1606_v5, 16  ;;  %v456_v26 = vrot.slane %v454_v18, 1  ;;  %v548_v28 = vshrl.u32 %v1731_v6, 16  ;;  %v550_v29 = vshll.u32 %v1731_v6, 16  ;;  %v1766_v47 = vld [vmem:[%s1719_s22 + $0x24] sm:$0xff]   ;;  %v1779_v58 = vld [vmem:[%s1719_s22 + $0x30] sm:$0xff]  }
  0x17   : > { %v444_v27 = vrot.slane %v442_v20, 1  ;;  %v688_v30 = vsel %vm679_vm0, %v686_v13, %v687_v22  ;;  %v461_v31 = vrot.slane %v459_v23, 1  ;;  %v555_v33 = vshll.u32 %v1608_v11, 16  ;;  %v1614_v48 = vld [vmem:[%s1719_s22 + $0x2c] ss:$0 sps:$4 sm:$0x11]  }
  0x18   : > { %754 = vrot.lane.b32.xlu1 %v712_v21, %s1666_s23  ;;  %v449_v32 = vrot.slane %v447_v24, 1  ;;  %v457_v35 = vor.u32 %v456_v26, %v452_v17  ;;  %v552_v37 = vrot.slane %v550_v29, 1  ;;  %v536_v38 = vshrl.u32 %v1722_v0, 16  ;;  %v1786_v7 = vld [vmem:[%s1719_s22 + $0x98] ss:$0 sps:$4 sm:$0x11]  }
  0x19   : > { %738 = vrot.lane.b32.xlu0 %v688_v30, %s1666_s23  ;;  %v445_v36 = vor.u32 %v444_v27, %v440_v19  ;;  %v557_v39 = vrot.slane %v555_v33, 1  ;;  %v538_v40 = vshll.u32 %v1722_v0, 16  ;;  %v543_v41 = vshll.u32 %v1604_v1, 16  ;;  %v1795_v15 = vld [vmem:[%s1719_s22 + $0x38] ss:$0 sps:$4 sm:$0x11]  }
  0x1a   : > { %v560_v42 = vshrl.u32 %v1751_v25, 16  ;;  %v462_v43 = vsel %vm426_vm1, %v457_v35, %v461_v31  ;;  %v553_v45 = vor.u32 %v552_v37, %v548_v28  ;;  %v562_v46 = vshll.u32 %v1751_v25, 16  ;;  %v1620_v24 = vld [vmem:[%s1719_s22 + $0xa4] ss:$0 sps:$4 sm:$0x11]   ;;  %v1810_v31 = vld [vmem:[%s1719_s22 + $0x3c] sm:$0xff]  }
  0x1b   : > { %v450_v44 = vsel %vm426_vm1, %v445_v36, %v449_v32  ;;  %v540_v50 = vrot.slane %v538_v40, 1  ;;  %v545_v51 = vrot.slane %v543_v41, 1  ;;  %v567_v52 = vshll.u32 %v1612_v34, 16  ;;  %v1622_v36 = vld [vmem:[%s1719_s22 + $0x44] ss:$0 sps:$4 sm:$0x11]  }
  0x1c   : > { %647 = vrot.lane.b32.xlu1 %v462_v43, %s1667_s24  ;;  %v713_v53 = vrot.slane %v1751_v25, 1  ;;  %v558_v54 = vsel %vm426_vm1, %v553_v45, %v557_v39  ;;  %v564_v55 = vrot.slane %v562_v46, 1  ;;  %v464_v56 = vshrl.u32 %v1766_v47, 16  ;;  %v1823_v46 = vld [vmem:[%s1719_s22 + $0xb0] ss:$0 sps:$4 sm:$0x11]  }
  0x1d   : > { %645 = vrot.lane.b32.xlu0 %v450_v44, %s1667_s24  ;;  %v466_v57 = vshll.u32 %v1766_v47, 16  ;;  %v541_v59 = vor.u32 %v540_v50, %v536_v38  ;;  %v569_v60 = vrot.slane %v567_v52, 1  ;;  %v471_v61 = vshll.u32 %v1614_v48, 16  ;;  %v1819_v44 = vld [vmem:[%s1719_s22 + $0xa8] sm:$0xff]  }
  0x1e   : > { %v714_v62 = vrot.slane %v1612_v34, 1  ;;  %v565_v1 = vor.u32 %v564_v55, %v560_v42  ;;  %v689_v4 = vrot.slane %v1766_v47, 1  ;;  %v690_v5 = vrot.slane %v1614_v48, 1  ;;  %v1826_v48 = vld [vmem:[%s1719_s22 + $0x48] sm:$0xff]  }
  0x1f   : > { %v468_v3 = vrot.slane %v466_v57, 1  ;;  %v546_v9 = vsel %vm426_vm1, %v541_v59, %v545_v51  ;;  %v473_v10 = vrot.slane %v471_v61, 1  ;;  %v572_v11 = vshrl.u32 %v1770_v49, 16  ;;  %v1838_v61 = vld [vmem:[%s1719_s22 + $0x50] ss:$0 sps:$4 sm:$0x11]  }
  0x20   : > { %663 = vrot.lane.b32.xlu1 %v558_v54, %s1667_s24  ;;  %v570_v12 = vsel %vm426_vm1, %v565_v1, %v569_v60  ;;  %v574_v14 = vshll.u32 %v1770_v49, 16  ;;  %v579_v16 = vshll.u32 %v1786_v7, 16  ;;  %v476_v17 = vshrl.u32 %v1779_v58, 16 }
  0x21   : > { %661 = vrot.lane.b32.xlu0 %v546_v9, %s1667_s24  ;;  %v469_v13 = vor.u32 %v468_v3, %v464_v56  ;;  %v478_v18 = vshll.u32 %v1779_v58, 16  ;;  %v483_v21 = vshll.u32 %v1795_v15, 16  ;;  %v586_v26 = vshll.u32 %v1782_v63, 16 }
  0x22   : > { %v576_v20 = vrot.slane %v574_v14, 1  ;;  %v581_v22 = vrot.slane %v579_v16, 1  ;;  %v715_v27 = vsel %vm679_vm0, %v713_v53, %v714_v62  ;;  %v691_v28 = vsel %vm679_vm0, %v689_v4, %v690_v5  ;;  %v1841_v62 = vld [vmem:[%s1719_s22 + $0xb4] sm:$0xff]  }
  0x23   : > { %v474_v19 = vsel %vm426_vm1, %v469_v13, %v473_v10  ;;  %v480_v23 = vrot.slane %v478_v18, 1  ;;  %v584_v30 = vshrl.u32 %v1782_v63, 16  ;;  %v485_v33 = vrot.slane %v483_v21, 1  ;;  %v1846_v4 = vld [vmem:[%s1719_s22 + $0x54] sm:$0xff]  }
  0x24   : > { %665 = vrot.lane.b32.xlu1 %v570_v12, %s1667_s24  ;;  %v577_v29 = vor.u32 %v576_v20, %v572_v11  ;;  %v588_v34 = vrot.slane %v586_v26, 1  ;;  %v591_v35 = vshll.u32 %v1620_v24, 16  ;;  %v488_v37 = vshrl.u32 %v1810_v31, 16  ;;  %v1854_v12 = vld [vmem:[%s1719_s22 + $0xbc] ss:$0 sps:$4 sm:$0x11]  }
  0x25   : > { %649 = vrot.lane.b32.xlu0 %v474_v19, %s1667_s24  ;;  %v481_v32 = vor.u32 %v480_v23, %v476_v17  ;;  %v490_v38 = vshll.u32 %v1810_v31, 16  ;;  %v495_v43 = vshll.u32 %v1622_v36, 16  ;;  %v716_v52 = vrot.slane %v1770_v49, 1  ;;  %v1862_v19 = vld [vmem:[%s1719_s22 + $0x5c] ss:$0 sps:$4 sm:$0x11]  }
  0x26   : > { %v582_v39 = vsel %vm426_vm1, %v577_v29, %v581_v22  ;;  %v589_v40 = vor.u32 %v588_v34, %v584_v30  ;;  %v593_v41 = vrot.slane %v591_v35, 1  ;;  %v717_v53 = vrot.slane %v1786_v7, 1 }
  0x27   : > { %v492_v42 = vrot.slane %v490_v38, 1  ;;  %v486_v45 = vsel %vm426_vm1, %v481_v32, %v485_v33  ;;  %v497_v51 = vrot.slane %v495_v43, 1  ;;  %v692_v54 = vrot.slane %v1779_v58, 1  ;;  %v1877_v38 = vld [vmem:[%s1719_s22 + $0xc0] sm:$0xff]  }
  0x28   : > { %756 = vrot.lane.b32.xlu1 %v715_v27, %s1666_s23  ;;  %v693_v55 = vrot.slane %v1795_v15, 1  ;;  %v719_v56 = vrot.slane %v1782_v63, 1  ;;  %v594_v57 = vsel %vm426_vm1, %v589_v40, %v593_v41  ;;  %v720_v59 = vrot.slane %v1620_v24, 1 }
  0x29   : > { %740 = vrot.lane.b32.xlu0 %v691_v28, %s1666_s23  ;;  %v493_v50 = vor.u32 %v492_v42, %v488_v37  ;;  %v598_v60 = vshll.u32 %v1819_v44, 16  ;;  %v502_v3 = vshll.u32 %v1826_v48, 16  ;;  %v695_v5 = vrot.slane %v1810_v31, 1  ;;  %v1881_v42 = vld [vmem:[%s1719_s22 + $0x60] sm:$0xff]  }
  0x2a   : > { %v696_v7 = vrot.slane %v1622_v36, 1  ;;  %v596_v9 = vshrl.u32 %v1819_v44, 16  ;;  %v603_v10 = vshll.u32 %v1823_v46, 16  ;;  %v500_v11 = vshrl.u32 %v1826_v48, 16 }
  0x2b   : > { %v498_v1 = vsel %vm426_vm1, %v493_v50, %v497_v51  ;;  %v718_v13 = vsel %vm679_vm0, %v716_v52, %v717_v53  ;;  %v600_v14 = vrot.slane %v598_v60, 1  ;;  %v610_v15 = vshll.u32 %v1841_v62, 16  ;;  %v1888_v51 = vld [vmem:[%s1719_s22 + $0xc8] ss:$0 sps:$4 sm:$0x11]  }
  0x2c   : > { %667 = vrot.lane.b32.xlu1 %v582_v39, %s1667_s24  ;;  %v694_v16 = vsel %vm679_vm0, %v692_v54, %v693_v55  ;;  %v504_v17 = vrot.slane %v502_v3, 1  ;;  %v507_v18 = vshll.u32 %v1838_v61, 16  ;;  %v514_v20 = vshll.u32 %v1846_v4, 16 }
  0x2d   : > { %651 = vrot.lane.b32.xlu0 %v486_v45, %s1667_s24  ;;  %v721_v21 = vsel %vm679_vm0, %v719_v56, %v720_v59  ;;  %v697_v22 = vsel %vm679_vm0, %v695_v5, %v696_v7  ;;  %v605_v23 = vrot.slane %v603_v10, 1  ;;  %v608_v24 = vshrl.u32 %v1841_v62, 16  ;;  %v1634_v56 = vld [vmem:[%s1719_s22 + $0x68] ss:$0 sps:$4 sm:$0x11]   ;;  %v1901_v59 = vld [vmem:[%s1719_s22] sm:$0xff]  }
  0x2e   : > { %v601_v26 = vor.u32 %v600_v14, %v596_v9  ;;  %v612_v27 = vrot.slane %v610_v15, 1  ;;  %v615_v28 = vshll.u32 %v1854_v12, 16  ;;  %v512_v29 = vshrl.u32 %v1846_v4, 16  ;;  %v1638_v5 = vld [vmem:[%s1719_s22 + $0x8] ss:$0 sps:$4 sm:$0x11]  }
  0x2f   : > { %v505_v30 = vor.u32 %v504_v17, %v500_v11  ;;  %v509_v32 = vrot.slane %v507_v18, 1  ;;  %v516_v33 = vrot.slane %v514_v20, 1  ;;  %v519_v34 = vshll.u32 %v1862_v19, 16  ;;  %v1636_v18 = vld [vmem:[%s1719_s22 + $0xd4] ss:$0 sps:$4 sm:$0x11]  }
  0x30   : > { %669 = vrot.lane.b32.xlu1 %v594_v57, %s1667_s24  ;;  %v606_v35 = vsel %vm426_vm1, %v601_v26, %v605_v23  ;;  %v613_v36 = vor.u32 %v612_v27, %v608_v24  ;;  %v617_v37 = vrot.slane %v615_v28, 1  ;;  %v722_v43 = vrot.slane %v1819_v44, 1  ;;  %v1898_v57 = vld [vmem:[%s1719_s22 + $0xcc] sm:$0xff]  }
  0x31   : > { %653 = vrot.lane.b32.xlu0 %v498_v1, %s1667_s24  ;;  %v510_v39 = vsel %vm426_vm1, %v505_v30, %v509_v32  ;;  %v517_v40 = vor.u32 %v516_v33, %v512_v29  ;;  %v521_v41 = vrot.slane %v519_v34, 1  ;;  %v723_v45 = vrot.slane %v1823_v46, 1 }
  0x32   : > { %v698_v50 = vrot.slane %v1826_v48, 1  ;;  %v618_v52 = vsel %vm426_vm1, %v613_v36, %v617_v37  ;;  %v699_v53 = vrot.slane %v1838_v61, 1  ;;  %v622_v54 = vshll.u32 %v1877_v38, 16 }
  0x33   : > { %v522_v55 = vsel %vm426_vm1, %v517_v40, %v521_v41  ;;  %v526_v46 = vshll.u32 %v1881_v42, 16  ;;  %v724_v60 = vsel %vm679_vm0, %v722_v43, %v723_v45  ;;  %v725_v1 = vrot.slane %v1841_v62, 1 }
  0x34   : > { %758 = vrot.lane.b32.xlu1 %v718_v13, %s1666_s23  ;;  %v726_v3 = vrot.slane %v1854_v12, 1  ;;  %v701_v61 = vrot.slane %v1846_v4, 1  ;;  %v702_v7 = vrot.slane %v1862_v19, 1  ;;  %v620_v9 = vshrl.u32 %v1877_v38, 16 }
  0x35   : > { %742 = vrot.lane.b32.xlu0 %v694_v16, %s1666_s23  ;;  %v680_v10 = vrot.slane %v1901_v59, 1  ;;  %v624_v11 = vrot.slane %v622_v54, 1  ;;  %v627_v13 = vshll.u32 %v1888_v51, 16  ;;  %v524_v14 = vshrl.u32 %v1881_v42, 16 }
  0x36   : > { %v681_v15 = vrot.slane %v1638_v5, 1  ;;  %v700_v12 = vsel %vm679_vm0, %v698_v50, %v699_v53  ;;  %v528_v16 = vrot.slane %v526_v46, 1  ;;  %v531_v17 = vshll.u32 %v1634_v56, 16 }
  0x37   : > { %v634_v20 = vshll.u32 %v1898_v57, 16  ;;  %v625_v23 = vor.u32 %v624_v11, %v620_v9  ;;  %v629_v24 = vrot.slane %v627_v13, 1  ;;  %v632_v26 = vshrl.u32 %v1898_v57, 16  ;;  %v1640_v9 = vld [vmem:[%s2313_s1 + $0x8] sm:$0xff]   ;;  %v1641_v13 = vld [vmem:[%s2313_s1] sm:$0xff]  }
  0x38   : > { %760 = vrot.lane.b32.xlu1 %v721_v21, %s1666_s23  ;;  %v682_v19 = vsel %vm679_vm0, %v680_v10, %v681_v15  ;;  %v727_v21 = vsel %vm679_vm0, %v725_v1, %v726_v3  ;;  %v529_v27 = vor.u32 %v528_v16, %v524_v14  ;;  %v533_v28 = vrot.slane %v531_v17, 1  ;;  %v1639_v3 = vld [vmem:[%s2313_s1 + $0x10] ss:$0 sps:$4 sm:$0x33]  }
  0x39   : > { %744 = vrot.lane.b32.xlu0 %v697_v22, %s1666_s23  ;;  %v703_v22 = vsel %vm679_vm0, %v701_v61, %v702_v7  ;;  %v636_v29 = vrot.slane %v634_v20, 1  ;;  %v639_v30 = vshll.u32 %v1636_v18, 16  ;;  %v704_v32 = vrot.slane %v1881_v42, 1  ;;  %1572 = vmatprep.subr.msk.bf16.mxu0 %vm1044_vm2, %v1639_v3 }
  0x3a   : > { %v705_v33 = vrot.slane %v1634_v56, 1  ;;  %v630_v34 = vsel %vm426_vm1, %v625_v23, %v629_v24  ;;  %v731_v41 = vrot.slane %v1898_v57, 1  ;;  %v732_v43 = vrot.slane %v1636_v18, 1  ;;  %1573 = vmatprep.subr.msk.bf16.mxu1 %vm1044_vm2, %v1639_v3 }
  0x3b   : > { %v637_v36 = vor.u32 %v636_v29, %v632_v26  ;;  %v641_v37 = vrot.slane %v639_v30, 1  ;;  %v728_v45 = vrot.slane %v1877_v38, 1  ;;  %v729_v50 = vrot.slane %v1888_v51, 1 }
  0x3c   : > { %671 = vrot.lane.b32.xlu1 %v606_v35, %s1667_s24  ;;  %v534_v35 = vsel %vm426_vm1, %v529_v27, %v533_v28  ;;  %v706_v40 = vsel %vm679_vm0, %v704_v32, %v705_v33  ;;  %v428_v53 = vshrl.u32 %v1901_v59, 16  ;;  %v733_v56 = vsel %vm679_vm0, %v731_v41, %v732_v43 }
  0x3d   : > { %655 = vrot.lane.b32.xlu0 %v510_v39, %s1667_s24  ;;  %v430_v39 = vshll.u32 %v1901_v59, 16  ;;  %v730_v46 = vsel %vm679_vm0, %v728_v45, %v729_v50  ;;  %v1046_v61 = vsel %vm1044_vm2, %v1639_v3, 0 }
  0x3e   : > { %1529 = vmatpush3.bf16.msra.mxu0 %v1046_v61  ;;  %1569 = vmatpush3.bf16.msra.mxu1 %v1046_v61 }
  0x3f   : > { %v432_v54 = vrot.slane %v430_v39, 1  ;;  %1530 = vmatprep.subr.bf16.mxu0 %v1640_v9  ;;  %1567 = vmatprep.subr.bf16.mxu1 %v1640_v9 }
  0x40   : > { %673 = vrot.lane.b32.xlu1 %v618_v52, %s1667_s24  ;;  %v642_v52 = vsel %vm426_vm1, %v637_v36, %v641_v37 }
  0x41   : > { %657 = vrot.lane.b32.xlu0 %v522_v55, %s1667_s24  ;;  %v435_v55 = vshll.u32 %v1638_v5, 16 }
  0x42   : > { %1531 = vmatpush3.bf16.msra.mxu0 %v1640_v9  ;;  %1570 = vmatpush3.bf16.msra.mxu1 %v1640_v9 }
  0x43   : > { %v437_v1 = vrot.slane %v435_v55, 1  ;;  %1532 = vmatprep.subr.bf16.mxu0 %v1641_v13  ;;  %1568 = vmatprep.subr.bf16.mxu1 %v1641_v13 }
  0x44   : > { %762 = vrot.lane.b32.xlu1 %v724_v60, %s1666_s23  ;;  %v433_v60 = vor.u32 %v432_v54, %v428_v53 }
  0x45   : > { %746 = vrot.lane.b32.xlu0 %v700_v12, %s1666_s23 }
  0x46   : > { %v438_v51 = vsel %vm426_vm1, %v433_v60, %v437_v1  ;;  %1533 = vmatpush3.bf16.msra.mxu0 %v1641_v13  ;;  %1571 = vmatpush3.bf16.msra.mxu1 %v1641_v13 }
  0x48   : > { %764 = vrot.lane.b32.xlu1 %v727_v21, %s1666_s23 }
  0x49   : > { %748 = vrot.lane.b32.xlu0 %v703_v22, %s1666_s23 }
  0x4c   : > { %675 = vrot.lane.b32.xlu1 %v630_v34, %s1667_s24 }
  0x4d   : > { %659 = vrot.lane.b32.xlu0 %v534_v35, %s1667_s24 }
  0x50   : > { %750 = vrot.lane.b32.xlu1 %v706_v40, %s1666_s23 }
  0x51   : > { %677 = vrot.lane.b32.xlu0 %v642_v52, %s1667_s24 }
  0x54   : > { %768 = vrot.lane.b32.xlu1 %v733_v56, %s1666_s23 }
  0x55   : > { %766 = vrot.lane.b32.xlu0 %v730_v46, %s1666_s23 }
  0x58   : > { %734 = vrot.lane.b32.xlu1 %v682_v19, %s1666_s23 }
  0x59   : > { %643 = vrot.lane.b32.xlu0 %v438_v51, %s1667_s24 }
  0x86   : > { %v753_v5 = vpop.permute.xlu1 %752 }
  0x87   : > { %v737_v7 = vpop.permute.xlu0 %736 }
  0x8a   : > { %v755_v10 = vpop.permute.xlu1 %754 }
  0x8b   : > { %v739_v11 = vpop.permute.xlu0 %738 }
  0x8e   : > { %v648_v14 = vpop.permute.xlu1 %647 }
  0x8f   : > { %v646_v15 = vpop.permute.xlu0 %645  ;;  %v776_v17 = vsel %vm770_vm3, %v1735_v8, %v648_v14 }
  0x90   : > { %v774_v12 = vsel %vm770_vm3, %v1726_v2, %v646_v15  ;;  %v1971_v2 = vsel %vm807_vm4, %v776_v17, %v739_v11 }
  0x91   : > { %v1959_v16 = vsel %vm807_vm4, %v774_v12, %v737_v7 }
  0x92   : > { %860 = vrot.lane.b32.xlu0 %v1959_v16, %s1668_s5  ;;  %v664_v18 = vpop.permute.xlu1 %663 }
  0x93   : > { %v662_v20 = vpop.permute.xlu0 %661  ;;  %v792_v22 = vsel %vm770_vm3, %v1731_v6, %v664_v18 }
  0x94   : > { %v790_v19 = vsel %vm770_vm3, %v1722_v0, %v662_v20  ;;  %v1980_v24 = vsel %vm807_vm4, %v792_v22, %v755_v10 }
  0x95   : > { %v1968_v21 = vsel %vm807_vm4, %v790_v19, %v753_v5 }
  0x96   : > { %876 = vrot.lane.b32.xlu1 %v1968_v21, %s1668_s5  ;;  %862 = vrot.lane.b32.xlu0 %v1971_v2, %s1668_s5  ;;  %v666_v8 = vpop.permute.xlu1 %665 }
  0x97   : > { %v650_v23 = vpop.permute.xlu0 %649  ;;  %v794_v30 = vsel %vm770_vm3, %v1751_v25, %v666_v8 }
  0x98   : > { %v778_v6 = vsel %vm770_vm3, %v1766_v47, %v650_v23 }
  0x9a   : > { %878 = vrot.lane.b32.xlu1 %v1980_v24, %s1668_s5  ;;  %893 = vrot.lane.b32.xlu0 %v1971_v2, %s1669_s6  ;;  %v757_v0 = vpop.permute.xlu1 %756 }
  0x9b   : > { %v741_v26 = vpop.permute.xlu0 %740  ;;  %v1998_v32 = vsel %vm807_vm4, %v794_v30, %v757_v0 }
  0x9c   : > { %v1989_v27 = vsel %vm807_vm4, %v778_v6, %v741_v26 }
  0x9e   : > { %909 = vrot.lane.b32.xlu1 %v1980_v24, %s1669_s6  ;;  %895 = vrot.lane.b32.xlu0 %v1989_v27, %s1669_s6  ;;  %v668_v28 = vpop.permute.xlu1 %667 }
  0x9f   : > { %v652_v29 = vpop.permute.xlu0 %651  ;;  %v796_v34 = vsel %vm770_vm3, %v1770_v49, %v668_v28 }
  0xa0   : > { %v780_v25 = vsel %vm770_vm3, %v1779_v58, %v652_v29 }
  0xa2   : > { %911 = vrot.lane.b32.xlu1 %v1998_v32, %s1669_s6  ;;  %864 = vrot.lane.b32.xlu0 %v1989_v27, %s1668_s5  ;;  %v670_v47 = vpop.permute.xlu1 %669 }
  0xa3   : > { %v654_v33 = vpop.permute.xlu0 %653  ;;  %v798_v45 = vsel %vm770_vm3, %v1782_v63, %v670_v47 }
  0xa4   : > { %v782_v41 = vsel %vm770_vm3, %v1810_v31, %v654_v33 }
  0xa6   : > { %880 = vrot.lane.b32.xlu1 %v1998_v32, %s1668_s5  ;;  %v759_v35 = vpop.permute.xlu1 %758 }
  0xa7   : > { %v743_v36 = vpop.permute.xlu0 %742  ;;  %v2011_v37 = vsel %vm807_vm4, %v796_v34, %v759_v35 }
  0xa8   : > { %v2014_v39 = vsel %vm807_vm4, %v780_v25, %v743_v36 }
  0xa9   : > { %866 = vrot.lane.b32.xlu0 %v2014_v39, %s1668_s5 }
  0xaa   : > { %882 = vrot.lane.b32.xlu1 %v2011_v37, %s1668_s5  ;;  %v761_v49 = vpop.permute.xlu1 %760 }
  0xab   : > { %v745_v40 = vpop.permute.xlu0 %744  ;;  %v2034_v52 = vsel %vm807_vm4, %v798_v45, %v761_v49 }
  0xac   : > { %v2029_v50 = vsel %vm807_vm4, %v782_v41, %v745_v40 }
  0xad   : > { %897 = vrot.lane.b32.xlu0 %v2014_v39, %s1669_s6 }
  0xae   : > { %913 = vrot.lane.b32.xlu1 %v2011_v37, %s1669_s6  ;;  %v672_v58 = vpop.permute.xlu1 %671 }
  0xaf   : > { %v656_v43 = vpop.permute.xlu0 %655  ;;  %v800_v63 = vsel %vm770_vm3, %v1819_v44, %v672_v58 }
  0xb0   : > { %v784_v55 = vsel %vm770_vm3, %v1826_v48, %v656_v43 }
  0xb1   : > { %899 = vrot.lane.b32.xlu0 %v2029_v50, %s1669_s6 }
  0xb2   : > { %915 = vrot.lane.b32.xlu1 %v2034_v52, %s1669_s6  ;;  %v674_v53 = vpop.permute.xlu1 %673 }
  0xb3   : > { %v658_v54 = vpop.permute.xlu0 %657  ;;  %v802_v5 = vsel %vm770_vm3, %v1841_v62, %v674_v53 }
  0xb4   : > { %v786_v51 = vsel %vm770_vm3, %v1846_v4, %v658_v54 }
  0xb5   : > { %868 = vrot.lane.b32.xlu0 %v2029_v50, %s1668_s5 }
  0xb6   : > { %884 = vrot.lane.b32.xlu1 %v2034_v52, %s1668_s5  ;;  %v763_v31 = vpop.permute.xlu1 %762 }
  0xb7   : > { %v747_v56 = vpop.permute.xlu0 %746  ;;  %v2047_v46 = vsel %vm807_vm4, %v800_v63, %v763_v31 }
  0xb8   : > { %v2050_v60 = vsel %vm807_vm4, %v784_v55, %v747_v56 }
  0xb9   : > { %870 = vrot.lane.b32.xlu0 %v2050_v60, %s1668_s5 }
  0xba   : > { %886 = vrot.lane.b32.xlu1 %v2047_v46, %s1668_s5  ;;  %v765_v44 = vpop.permute.xlu1 %764 }
  0xbb   : > { %v749_v1 = vpop.permute.xlu0 %748  ;;  %v2070_v7 = vsel %vm807_vm4, %v802_v5, %v765_v44 }
  0xbc   : > { %v2065_v61 = vsel %vm807_vm4, %v786_v51, %v749_v1 }
  0xbd   : > { %901 = vrot.lane.b32.xlu0 %v2050_v60, %s1669_s6 }
  0xbe   : > { %917 = vrot.lane.b32.xlu1 %v2047_v46, %s1669_s6  ;;  %v676_v48 = vpop.permute.xlu1 %675 }
  0xbf   : > { %v660_v3 = vpop.permute.xlu0 %659  ;;  %v804_v11 = vsel %vm770_vm3, %v1877_v38, %v676_v48 }
  0xc0   : > { %v788_v13 = vsel %vm770_vm3, %v1881_v42, %v660_v3 }
  0xc1   : > { %903 = vrot.lane.b32.xlu0 %v2065_v61, %s1669_s6 }
  0xc2   : > { %919 = vrot.lane.b32.xlu1 %v2070_v7, %s1669_s6  ;;  %v751_v9 = vpop.permute.xlu1 %750 }
  0xc3   : > { %v678_v10 = vpop.permute.xlu0 %677  ;;  %v825_v12 = vsel %vm807_vm4, %v788_v13, %v751_v9 }
  0xc4   : > { %v806_v62 = vsel %vm770_vm3, %v1898_v57, %v678_v10 }
  0xc5   : > { %872 = vrot.lane.b32.xlu0 %v2065_v61, %s1668_s5 }
  0xc6   : > { %888 = vrot.lane.b32.xlu1 %v2070_v7, %s1668_s5  ;;  %v769_v4 = vpop.permute.xlu1 %768 }
  0xc7   : > { %v767_v14 = vpop.permute.xlu0 %766  ;;  %v843_v15 = vsel %vm807_vm4, %v806_v62, %v769_v4 }
  0xc8   : > { %v841_v17 = vsel %vm807_vm4, %v804_v11, %v767_v14 }
  0xc9   : > { %874 = vrot.lane.b32.xlu0 %v825_v12, %s1668_s5 }
  0xca   : > { %890 = vrot.lane.b32.xlu1 %v841_v17, %s1668_s5  ;;  %v735_v57 = vpop.permute.xlu1 %734 }
  0xcb   : > { %v644_v18 = vpop.permute.xlu0 %643 }
  0xcc   : > { %v772_v20 = vsel %vm770_vm3, %v1901_v59, %v644_v18 }
  0xcd   : > { %905 = vrot.lane.b32.xlu0 %v825_v12, %s1669_s6  ;;  %v809_v38 = vsel %vm807_vm4, %v772_v20, %v735_v57 }
  0xce   : > { %921 = vrot.lane.b32.xlu1 %v841_v17, %s1669_s6 }
  0xd1   : > { %907 = vrot.lane.b32.xlu0 %v1968_v21, %s1669_s6 }
  0xd2   : > { %923 = vrot.lane.b32.xlu1 %v843_v15, %s1669_s6 }
 0x104   : > { %v861_v42 = vpop.permute.xlu0 %860 }
 0x105   : > { %v927_v8 = vsel %vm925_vm5, %v809_v38, %v861_v42 }
 0x108   : > { %v877_v19 = vpop.permute.xlu1 %876  ;;  %v863_v22 = vpop.permute.xlu0 %862 }
 0x109   : > { %v943_v6 = vsel %vm925_vm5, %v825_v12, %v877_v19  ;;  %v929_v26 = vsel %vm925_vm5, %v1959_v16, %v863_v22  ;;  %v2162_v22 = vld [vmem:[%s2314_s2] ss:$0 sm:$0xff] }
 0x10c   : > { %v879_v59 = vpop.permute.xlu1 %878  ;;  %v894_v23 = vpop.permute.xlu0 %893 }
 0x10d   : > { %v960_v0 = vsel %vm958_vm6, %v927_v8, %v894_v23  ;;  %v945_v33 = vsel %vm925_vm5, %v1968_v21, %v879_v59 }
 0x10e   : > { %1534 = vmatprep.mubr.msk.bf16.mxu0 %vm1011_vm7, %v960_v0 }
 0x110   : > { %v910_v28 = vpop.permute.xlu1 %909  ;;  %v896_v29 = vpop.permute.xlu0 %895 }
 0x111   : > { %v962_v30 = vsel %vm958_vm6, %v929_v26, %v896_v29  ;;  %v976_v47 = vsel %vm958_vm6, %v943_v6, %v910_v28 }
 0x112   : > { %1535 = vmatmul.mubr.msk.bf16.vlgmr.msra.gmra.mxu0 %vm1011_vm7, %v962_v30  ;;  %1550 = vmatprep.mubr.msk.bf16.mxu1 %vm1011_vm7, %v976_v47 }
 0x114   : > { %v912_v34 = vpop.permute.xlu1 %911  ;;  %v865_v25 = vpop.permute.xlu0 %864 }
 0x115   : > { %v978_v35 = vsel %vm958_vm6, %v945_v33, %v912_v34  ;;  %v931_v40 = vsel %vm925_vm5, %v1971_v2, %v865_v25 }
 0x116   : > { %1551 = vmatmul.mubr.msk.bf16.vlgmr.msra.gmra.mxu1 %vm1011_vm7, %v978_v35 }
 0x118   : > { %v881_v16 = vpop.permute.xlu1 %880 }
 0x119   : > { %v947_v41 = vsel %vm925_vm5, %v1980_v24, %v881_v16 }
 0x11b   : > { %v867_v36 = vpop.permute.xlu0 %866 }
 0x11c   : > { %v883_v49 = vpop.permute.xlu1 %882  ;;  %v933_v53 = vsel %vm925_vm5, %v1989_v27, %v867_v36 }
 0x11d   : > { %v949_v2 = vsel %vm925_vm5, %v1998_v32, %v883_v49 }
 0x11f   : > { %v898_v58 = vpop.permute.xlu0 %897 }
 0x120   : > { %v964_v43 = vsel %vm958_vm6, %v931_v40, %v898_v58  ;;  %v914_v45 = vpop.permute.xlu1 %913 }
 0x121   : > { %v980_v21 = vsel %vm958_vm6, %v947_v41, %v914_v45  ;;  %1538 = vmatprep.mubr.msk.bf16.mxu0 %vm1011_vm7, %v964_v43 }
 0x122   : > { %1554 = vmatprep.mubr.msk.bf16.mxu1 %vm1011_vm7, %v980_v21 }
 0x123   : > { %v900_v54 = vpop.permute.xlu0 %899 }
 0x124   : > { %v966_v63 = vsel %vm958_vm6, %v933_v53, %v900_v54  ;;  %v916_v31 = vpop.permute.xlu1 %915 }
 0x125   : > { %v982_v24 = vsel %vm958_vm6, %v949_v2, %v916_v31  ;;  %1539 = vmatmul.mubr.msk.bf16.gmra.mxu0 %vm1011_vm7, %v966_v63 }
 0x126   : > { %1555 = vmatmul.mubr.msk.bf16.gmra.mxu1 %vm1011_vm7, %v982_v24 }
 0x127   : > { %v869_v55 = vpop.permute.xlu0 %868 }
 0x128   : > { %v885_v56 = vpop.permute.xlu1 %884  ;;  %v935_v27 = vsel %vm925_vm5, %v2014_v39, %v869_v55 }
 0x129   : > { %v951_v32 = vsel %vm925_vm5, %v2011_v37, %v885_v56 }
 0x12b   : > { %v871_v44 = vpop.permute.xlu0 %870 }
 0x12c   : > { %v887_v1 = vpop.permute.xlu1 %886  ;;  %v937_v9 = vsel %vm925_vm5, %v2029_v50, %v871_v44 }
 0x12d   : > { %v953_v39 = vsel %vm925_vm5, %v2034_v52, %v887_v1 }
 0x12f   : > { %v902_v48 = vpop.permute.xlu0 %901 }
 0x130   : > { %v968_v51 = vsel %vm958_vm6, %v935_v27, %v902_v48  ;;  %v918_v3 = vpop.permute.xlu1 %917 }
 0x131   : > { %v984_v5 = vsel %vm958_vm6, %v951_v32, %v918_v3  ;;  %1542 = vmatprep.mubr.msk.bf16.mxu0 %vm1011_vm7, %v968_v51 }
 0x132   : > { %1558 = vmatprep.mubr.msk.bf16.mxu1 %vm1011_vm7, %v984_v5 }
 0x133   : > { %v904_v10 = vpop.permute.xlu0 %903 }
 0x134   : > { %v970_v62 = vsel %vm958_vm6, %v937_v9, %v904_v10  ;;  %v920_v4 = vpop.permute.xlu1 %919 }
 0x135   : > { %v986_v37 = vsel %vm958_vm6, %v953_v39, %v920_v4  ;;  %1543 = vmatmul.mubr.msk.bf16.gmra.mxu0 %vm1011_vm7, %v970_v62 }
 0x136   : > { %1559 = vmatmul.mubr.msk.bf16.gmra.mxu1 %vm1011_vm7, %v986_v37 }
 0x137   : > { %v873_v11 = vpop.permute.xlu0 %872 }
 0x138   : > { %v889_v13 = vpop.permute.xlu1 %888  ;;  %v939_v50 = vsel %vm925_vm5, %v2050_v60, %v873_v11 }
 0x139   : > { %v955_v52 = vsel %vm925_vm5, %v2047_v46, %v889_v13 }
 0x13b   : > { %v875_v14 = vpop.permute.xlu0 %874 }
 0x13c   : > { %v891_v15 = vpop.permute.xlu1 %890  ;;  %v941_v20 = vsel %vm925_vm5, %v2065_v61, %v875_v14  ;;  %v2167_v61 = vld [vmem:[%s2315_s3] ss:$0 sm:$0xff] }
 0x13d   : > { %v957_v60 = vsel %vm925_vm5, %v2070_v7, %v891_v15 }
 0x13f   : > { %v906_v12 = vpop.permute.xlu0 %905 }
 0x140   : > { %v972_v17 = vsel %vm958_vm6, %v939_v50, %v906_v12  ;;  %v922_v57 = vpop.permute.xlu1 %921 }
 0x141   : > { %v988_v18 = vsel %vm958_vm6, %v955_v52, %v922_v57  ;;  %1546 = vmatprep.mubr.msk.bf16.mxu0 %vm1011_vm7, %v972_v17 }
 0x142   : > { %1562 = vmatprep.mubr.msk.bf16.mxu1 %vm1011_vm7, %v988_v18 }
 0x143   : > { %v908_v38 = vpop.permute.xlu0 %907 }
 0x144   : > { %v974_v42 = vsel %vm958_vm6, %v941_v20, %v908_v38  ;;  %v924_v46 = vpop.permute.xlu1 %923 }
 0x145   : > { %v990_v19 = vsel %vm958_vm6, %v957_v60, %v924_v46  ;;  %1547 = vmatmul.mubr.msk.bf16.gmra.mxu0 %vm1011_vm7, %v974_v42 }
 0x146   : > { %1563 = vmatmul.mubr.msk.bf16.gmra.mxu1 %vm1011_vm7, %v990_v19 }
 0x1d2   : > { %v1536_v8 = vpop.f32.mrf.mxu0 }
 0x1d3   : > { %v1218_v7 = vmul.f32 %v1536_v8, %v2162_v22 }
 0x1d4   : > { %v1082_v59 = vpop.f32.mrf.mxu0 }
 0x1d5   : > { %v1257_v23 = vadd.f32 %v2167_v61, %v1218_v7  ;;  %v1216_v0 = vmul.f32 %v2162_v22, %v1082_v59 }
 0x1d6   : > { %v1537_v6 = vpop.f32.mrf.mxu0  ;;  %v1552_v26 = vpop.f32.mrf.mxu1 }
 0x1d7   : > { %v1289_v28 = vmax.f32 %v1257_v23, 0.0  ;;  %v1255_v29 = vadd.f32 %v2167_v61, %v1216_v0  ;;  %v1219_v30 = vmul.f32 %v1537_v6, %v2162_v22  ;;  %v1234_v47 = vmul.f32 %v1552_v26, %v2162_v22 }
 0x1d8   : > { %v1085_v33 = vpop.f32.mrf.mxu0  ;;  %v1146_v34 = vpop.f32.mrf.mxu1 }
 0x1d9   : > { %1322 = vst.msk [vmem:[%s2176_s14 + $0x10] sm:$0xff] %vm1319_vm8, %v1289_v28  ;;  %v1287_v35 = vmax.f32 %v1255_v29, 0.0  ;;  %v1258_v25 = vadd.f32 %v2167_v61, %v1219_v30  ;;  %v1273_v16 = vadd.f32 %v2167_v61, %v1234_v47  ;;  %v1217_v36 = vmul.f32 %v2162_v22, %v1085_v33 }
 0x1da   : > { %v1232_v49 = vmul.f32 %v2162_v22, %v1146_v34  ;;  %v1553_v40 = vpop.f32.mrf.mxu1 }
 0x1db   : > { %1320 = vst.msk [vmem:[%s2176_s14] sm:$0xff] %vm1319_vm8, %v1287_v35  ;;  %v1290_v58 = vmax.f32 %v1258_v25, 0.0  ;;  %v1305_v41 = vmax.f32 %v1273_v16, 0.0  ;;  %v1256_v43 = vadd.f32 %v2167_v61, %v1217_v36  ;;  %v1235_v45 = vmul.f32 %v1553_v40, %v2162_v22 }
 0x1dc   : > { %v1271_v21 = vadd.f32 %v2167_v61, %v1232_v49  ;;  %v1149_v53 = vpop.f32.mrf.mxu1 }
 0x1dd   : > { %1323 = vst.msk [vmem:[%s2176_s14 + $0x18] sm:$0xff] %vm1319_vm8, %v1290_v58  ;;  %1338 = vst.msk [vmem:[%s2176_s14 + $0x90] sm:$0xff] %vm1319_vm8, %v1305_v41  ;;  %v1288_v54 = vmax.f32 %v1256_v43, 0.0  ;;  %v1274_v2 = vadd.f32 %v2167_v61, %v1235_v45  ;;  %v1233_v63 = vmul.f32 %v2162_v22, %v1149_v53 }
 0x1de   : > { %v1303_v31 = vmax.f32 %v1271_v21, 0.0 }
 0x1df   : > { %1321 = vst.msk [vmem:[%s2176_s14 + $0x8] sm:$0xff] %vm1319_vm8, %v1288_v54  ;;  %v1306_v24 = vmax.f32 %v1274_v2, 0.0  ;;  %v1272_v55 = vadd.f32 %v2167_v61, %v1233_v63 }
 0x1e0   : > { %1336 = vst.msk [vmem:[%s2176_s14 + $0x80] sm:$0xff] %vm1319_vm8, %v1303_v31 }
 0x1e1   : > { %1339 = vst.msk [vmem:[%s2176_s14 + $0x98] sm:$0xff] %vm1319_vm8, %v1306_v24  ;;  %v1304_v56 = vmax.f32 %v1272_v55, 0.0 }
 0x1e3   : > { %1337 = vst.msk [vmem:[%s2176_s14 + $0x88] sm:$0xff] %vm1319_vm8, %v1304_v56 }
 0x1e5   : > { %v1540_v44 = vpop.f32.mrf.mxu0 }
 0x1e6   : > { %v1222_v1 = vmul.f32 %v1540_v44, %v2162_v22  ;;  %v1556_v27 = vpop.f32.mrf.mxu1 }
 0x1e7   : > { %v1238_v48 = vmul.f32 %v1556_v27, %v2162_v22  ;;  %v1098_v32 = vpop.f32.mrf.mxu0 }
 0x1e8   : > { %v1261_v51 = vadd.f32 %v2167_v61, %v1222_v1  ;;  %v1220_v3 = vmul.f32 %v2162_v22, %v1098_v32  ;;  %v1162_v5 = vpop.f32.mrf.mxu1 }
 0x1e9   : > { %v1277_v9 = vadd.f32 %v2167_v61, %v1238_v48  ;;  %v1236_v10 = vmul.f32 %v2162_v22, %v1162_v5  ;;  %v1541_v39 = vpop.f32.mrf.mxu0 }
 0x1ea   : > { %v1293_v62 = vmax.f32 %v1261_v51, 0.0  ;;  %v1259_v4 = vadd.f32 %v2167_v61, %v1220_v3  ;;  %v1223_v37 = vmul.f32 %v1541_v39, %v2162_v22  ;;  %v1557_v11 = vpop.f32.mrf.mxu1 }
 0x1eb   : > { %v1309_v13 = vmax.f32 %v1277_v9, 0.0  ;;  %v1275_v14 = vadd.f32 %v2167_v61, %v1236_v10  ;;  %v1239_v15 = vmul.f32 %v1557_v11, %v2162_v22  ;;  %v1101_v50 = vpop.f32.mrf.mxu0 }
 0x1ec   : > { %1326 = vst.msk [vmem:[%s2176_s14 + $0x30] sm:$0xff] %vm1319_vm8, %v1293_v62  ;;  %v1291_v12 = vmax.f32 %v1259_v4, 0.0  ;;  %v1262_v52 = vadd.f32 %v2167_v61, %v1223_v37  ;;  %v1221_v17 = vmul.f32 %v2162_v22, %v1101_v50  ;;  %v1165_v57 = vpop.f32.mrf.mxu1 }
 0x1ed   : > { %1342 = vst.msk [vmem:[%s2176_s14 + $0xb0] sm:$0xff] %vm1319_vm8, %v1309_v13  ;;  %v1307_v18 = vmax.f32 %v1275_v14, 0.0  ;;  %v1278_v20 = vadd.f32 %v2167_v61, %v1239_v15  ;;  %v1237_v38 = vmul.f32 %v2162_v22, %v1165_v57 }
 0x1ee   : > { %1324 = vst.msk [vmem:[%s2176_s14 + $0x20] sm:$0xff] %vm1319_vm8, %v1291_v12  ;;  %v1294_v60 = vmax.f32 %v1262_v52, 0.0  ;;  %v1260_v42 = vadd.f32 %v2167_v61, %v1221_v17 }
 0x1ef   : > { %1340 = vst.msk [vmem:[%s2176_s14 + $0xa0] sm:$0xff] %vm1319_vm8, %v1307_v18  ;;  %v1310_v46 = vmax.f32 %v1278_v20, 0.0  ;;  %v1276_v19 = vadd.f32 %v2167_v61, %v1237_v38 }
 0x1f0   : > { %1327 = vst.msk [vmem:[%s2176_s14 + $0x38] sm:$0xff] %vm1319_vm8, %v1294_v60  ;;  %v1292_v8 = vmax.f32 %v1260_v42, 0.0 }
 0x1f1   : > { %1343 = vst.msk [vmem:[%s2176_s14 + $0xb8] sm:$0xff] %vm1319_vm8, %v1310_v46  ;;  %v1308_v7 = vmax.f32 %v1276_v19, 0.0 }
 0x1f2   : > { %1325 = vst.msk [vmem:[%s2176_s14 + $0x28] sm:$0xff] %vm1319_vm8, %v1292_v8 }
 0x1f3   : > { %1341 = vst.msk [vmem:[%s2176_s14 + $0xa8] sm:$0xff] %vm1319_vm8, %v1308_v7 }
 0x1f5   : > { %v1544_v59 = vpop.f32.mrf.mxu0 }
 0x1f6   : > { %v1226_v23 = vmul.f32 %v1544_v59, %v2162_v22  ;;  %v1560_v0 = vpop.f32.mrf.mxu1 }
 0x1f7   : > { %v1242_v6 = vmul.f32 %v1560_v0, %v2162_v22  ;;  %v1114_v26 = vpop.f32.mrf.mxu0 }
 0x1f8   : > { %v1265_v28 = vadd.f32 %v2167_v61, %v1226_v23  ;;  %v1224_v29 = vmul.f32 %v2162_v22, %v1114_v26  ;;  %v1178_v30 = vpop.f32.mrf.mxu1 }
 0x1f9   : > { %v1281_v47 = vadd.f32 %v2167_v61, %v1242_v6  ;;  %v1240_v33 = vmul.f32 %v2162_v22, %v1178_v30  ;;  %v1545_v34 = vpop.f32.mrf.mxu0 }
 0x1fa   : > { %v1297_v35 = vmax.f32 %v1265_v28, 0.0  ;;  %v1263_v25 = vadd.f32 %v2167_v61, %v1224_v29  ;;  %v1227_v16 = vmul.f32 %v1545_v34, %v2162_v22  ;;  %v1561_v36 = vpop.f32.mrf.mxu1 }
 0x1fb   : > { %v1313_v49 = vmax.f32 %v1281_v47, 0.0  ;;  %v1279_v40 = vadd.f32 %v2167_v61, %v1240_v33  ;;  %v1243_v58 = vmul.f32 %v1561_v36, %v2162_v22  ;;  %v1117_v41 = vpop.f32.mrf.mxu0 }
 0x1fc   : > { %1330 = vst.msk [vmem:[%s2176_s14 + $0x50] sm:$0xff] %vm1319_vm8, %v1297_v35  ;;  %v1295_v43 = vmax.f32 %v1263_v25, 0.0  ;;  %v1266_v45 = vadd.f32 %v2167_v61, %v1227_v16  ;;  %v1225_v21 = vmul.f32 %v2162_v22, %v1117_v41  ;;  %v1181_v53 = vpop.f32.mrf.mxu1 }
 0x1fd   : > { %1346 = vst.msk [vmem:[%s2176_s14 + $0xd0] sm:$0xff] %vm1319_vm8, %v1313_v49  ;;  %v1311_v54 = vmax.f32 %v1279_v40, 0.0  ;;  %v1282_v2 = vadd.f32 %v2167_v61, %v1243_v58  ;;  %v1241_v63 = vmul.f32 %v2162_v22, %v1181_v53 }
 0x1fe   : > { %1328 = vst.msk [vmem:[%s2176_s14 + $0x40] sm:$0xff] %vm1319_vm8, %v1295_v43  ;;  %v1298_v31 = vmax.f32 %v1266_v45, 0.0  ;;  %v1264_v24 = vadd.f32 %v2167_v61, %v1225_v21 }
 0x1ff   : > { %1344 = vst.msk [vmem:[%s2176_s14 + $0xc0] sm:$0xff] %vm1319_vm8, %v1311_v54  ;;  %v1314_v55 = vmax.f32 %v1282_v2, 0.0  ;;  %v1280_v56 = vadd.f32 %v2167_v61, %v1241_v63 }
 0x200   : > { %1331 = vst.msk [vmem:[%s2176_s14 + $0x58] sm:$0xff] %vm1319_vm8, %v1298_v31  ;;  %v1296_v44 = vmax.f32 %v1264_v24, 0.0 }
 0x201   : > { %1347 = vst.msk [vmem:[%s2176_s14 + $0xd8] sm:$0xff] %vm1319_vm8, %v1314_v55  ;;  %v1312_v1 = vmax.f32 %v1280_v56, 0.0 }
 0x202   : > { %1329 = vst.msk [vmem:[%s2176_s14 + $0x48] sm:$0xff] %vm1319_vm8, %v1296_v44 }
 0x203   : > { %1345 = vst.msk [vmem:[%s2176_s14 + $0xc8] sm:$0xff] %vm1319_vm8, %v1312_v1 }
 0x205   : > { %v1548_v27 = vpop.f32.mrf.mxu0 }
 0x206   : > { %v1230_v48 = vmul.f32 %v1548_v27, %v2162_v22  ;;  %v1564_v32 = vpop.f32.mrf.mxu1 }
 0x207   : > { %v1246_v51 = vmul.f32 %v1564_v32, %v2162_v22  ;;  %v1130_v3 = vpop.f32.mrf.mxu0 }
 0x208   : > { %v1269_v5 = vadd.f32 %v2167_v61, %v1230_v48  ;;  %v1228_v9 = vmul.f32 %v2162_v22, %v1130_v3  ;;  %v1194_v10 = vpop.f32.mrf.mxu1 }
 0x209   : > { %v1285_v39 = vadd.f32 %v2167_v61, %v1246_v51  ;;  %v1244_v62 = vmul.f32 %v2162_v22, %v1194_v10  ;;  %v1549_v4 = vpop.f32.mrf.mxu0 }
 0x20a   : > { %v1301_v37 = vmax.f32 %v1269_v5, 0.0  ;;  %v1267_v11 = vadd.f32 %v2167_v61, %v1228_v9  ;;  %v1231_v13 = vmul.f32 %v1549_v4, %v2162_v22  ;;  %v1565_v14 = vpop.f32.mrf.mxu1 }
 0x20b   : > { %v1317_v15 = vmax.f32 %v1285_v39, 0.0  ;;  %v1283_v50 = vadd.f32 %v2167_v61, %v1244_v62  ;;  %v1247_v12 = vmul.f32 %v1565_v14, %v2162_v22  ;;  %v1133_v52 = vpop.f32.mrf.mxu0 }
 0x20c   : > { %1334 = vst.msk [vmem:[%s2176_s14 + $0x70] sm:$0xff] %vm1319_vm8, %v1301_v37  ;;  %v1299_v17 = vmax.f32 %v1267_v11, 0.0  ;;  %v1270_v57 = vadd.f32 %v2167_v61, %v1231_v13  ;;  %v1229_v18 = vmul.f32 %v2162_v22, %v1133_v52  ;;  %v1197_v20 = vpop.f32.mrf.mxu1 }
 0x20d   : > { %1350 = vst.msk [vmem:[%s2176_s14 + $0xf0] sm:$0xff] %vm1319_vm8, %v1317_v15  ;;  %v1315_v38 = vmax.f32 %v1283_v50, 0.0  ;;  %v1286_v60 = vadd.f32 %v2167_v61, %v1247_v12  ;;  %v1245_v42 = vmul.f32 %v2162_v22, %v1197_v20 }
 0x20e   : > { %1332 = vst.msk [vmem:[%s2176_s14 + $0x60] sm:$0xff] %vm1319_vm8, %v1299_v17  ;;  %v1302_v46 = vmax.f32 %v1270_v57, 0.0  ;;  %v1268_v19 = vadd.f32 %v2167_v61, %v1229_v18 }
 0x20f   : > { %1348 = vst.msk [vmem:[%s2176_s14 + $0xe0] sm:$0xff] %vm1319_vm8, %v1315_v38  ;;  %v1318_v8 = vmax.f32 %v1286_v60, 0.0  ;;  %v1284_v7 = vadd.f32 %v2167_v61, %v1245_v42 }
 0x210   : > { %1335 = vst.msk [vmem:[%s2176_s14 + $0x78] sm:$0xff] %vm1319_vm8, %v1302_v46  ;;  %v1300_v59 = vmax.f32 %v1268_v19, 0.0 }
 0x211   : > { %1351 = vst.msk [vmem:[%s2176_s14 + $0xf8] sm:$0xff] %vm1319_vm8, %v1318_v8  ;;  %v1316_v23 = vmax.f32 %v1284_v7, 0.0 }
 0x212   : > { %1333 = vst.msk [vmem:[%s2176_s14 + $0x68] sm:$0xff] %vm1319_vm8, %v1300_v59 }
 0x213   : > { %1349 = vst.msk [vmem:[%s2176_s14 + $0xe8] sm:$0xff] %vm1319_vm8, %v1316_v23 }
 0x214 PF: > { %s14_s17 = sadd.s32 1, %s1664_s17   ;;  %s2317_s15 = smov %s1660_s16 }
 0x215   : > { %p11_p5 = scmp.ge.s32.totalorder %s14_s17, 4   ;;  %s2318_s16 = smov %s2320_s18 }
 0x217   :  { %13 = sbr.rel (!%p11_p5) target bundleno = 2 (0x2), region = 67 }

// kernel: up_conv_pallas.2
= control target key start
LH: loop header
LB: loop body
LE: loop exit
PB: predicated region body
PF: predicated region fallthrough
CT: control target
= control target key end

     0   :  { %s1640_s9 = smov 0   ;;  %s1642_s10 = smov 0   ;;  %s2174_s0 = inlined_call_operand.vmem [shape: bf16[2,18,18,4], index: 0, kind: input, shape index: {}]   ;;  %s2175_s1 = inlined_call_operand.vmem [shape: bf16[36,32], index: 1, kind: input, shape index: {}]   ;;  %s2176_s2 = inlined_call_operand.vmem [shape: f32[2,1,2,32], index: 2, kind: output, shape index: {}]  }
   0x1   :  { %s1644_s11 = smov 0  }
   0x2 LB: > { %s24_s12 = sadd.s32 1, %s1615_s10  ;;  %p1404_p0 = scmp.ge.s32.totalorder %s1619_s11, 1  ;;  %s1619_s11 = sphi %s1644_s11, %s12_s11   ;;  %s1615_s10 = sphi %s1642_s10, %s2178_s10   ;;  %s1611_s9 = sphi %s1640_s9, %s2177_s9  }
   0x3   : > { %p26_p1 = scmp.ge.s32.totalorder %s24_s12, 2  ;;  %p126_p2 = scmp.lt.s32.totalorder %s1619_s11, 3 }
   0x5   : > { %s2180_s12 = smov (%p26_p1, %s24_s12), 0  ;;  %p127_p3 = pnand %p1404_p0, %p126_p2 }
   0x6   : > { %p150_p4 = scmp.lt.s32.totalorder (!%p127_p3), %s1611_s9, 1  ;;  %s1621_s17 = smov (!%p127_p3), 8  }
   0x7   : > { %130 = sbr.rel (%p127_p3) target bundleno = 548 (0x224), region = 28  ;;  %s1622_s18 = smov (!%p127_p3), 4  }
   0x8   : > { %s1623_s25 = smov (!%p127_p3), 12   ;;  %s1624_s26 = smov (!%p127_p3), 24  }
   0xc   : > { %s2182_s9 = smov (!%p150_p4, %s1611_s9), 1  ;;  %vm618_vm0 = vcmask 1046528   ;;  %vm365_vm1 = vsmask.f32 7424  ;;  %vm983_vm2 = vcmask 1041408   ;;  %vm709_vm3 = vcmask 31744  }
   0xd   : > { %s1529_s13 = smul.u32 216, %s2182_s9  ;;  %vm746_vm4 = vcmask 64512   ;;  %vm864_vm5 = vcmask 97280   ;;  %vm897_vm6 = vcmask 195584   ;;  %vm950_vm7 = vcmask 293888   ;;  %s1406_s27 = sshll.u32 %s2182_s9, 1 }
   0xe   : > { %vm1148_vm8 = vcmask 261120   ;;  %vm1323_vm9 = vcmask 1040384   ;;  %s161_s30 = scalar_lea.vmem %s2176_s2, %s1406_s27  ;;  %vm1325_vm10 = vcmask 254976  }
   0xf   : > { %s1664_s16 = scalar_lea.vmem %s2174_s0, %s1529_s13 }
  0x10   : > { %v1667_v0 = vld [vmem:[%s1664_s16 + $0x18] sm:$0xff]   ;;  %v1559_v1 = vld [vmem:[%s1664_s16 + $0x20] ss:$0 sps:$4 sm:$0x11]   ;;  %v1671_v2 = vld [vmem:[%s1664_s16 + $0xc] sm:$0xff]  }
  0x11   : > { %v625_v3 = vrot.slane %v1667_v0, 1  ;;  %v626_v4 = vrot.slane %v1559_v1, 1  ;;  %v1561_v5 = vld [vmem:[%s1664_s16 + $0x14] ss:$0 sps:$4 sm:$0x11]   ;;  %v622_v7 = vrot.slane %v1671_v2, 1 }
  0x12   : > { %v1676_v6 = vld [vmem:[%s1664_s16 + $0x30] sm:$0xff]   ;;  %v1680_v8 = vld [vmem:[%s1664_s16 + $0x24] sm:$0xff]   ;;  %v623_v10 = vrot.slane %v1561_v5, 1  ;;  %v1684_v11 = vld [vmem:[%s1664_s16 + $0x38] ss:$0 sps:$4 sm:$0x11]  }
  0x13   : > { %v627_v9 = vsel %vm618_vm0, %v625_v3, %v626_v4  ;;  %v631_v12 = vrot.slane %v1676_v6, 1  ;;  %v628_v13 = vrot.slane %v1680_v8, 1  ;;  %v632_v15 = vrot.slane %v1684_v11, 1  ;;  %v1565_v16 = vld [vmem:[%s1664_s16 + $0x2c] ss:$0 sps:$4 sm:$0x11]  }
  0x14   : > { %677 = vrot.lane.b32.xlu0 %v627_v9, %s1621_s17  ;;  %v624_v14 = vsel %vm618_vm0, %v622_v7, %v623_v10  ;;  %v629_v18 = vrot.slane %v1565_v16, 1  ;;  %v1695_v19 = vld [vmem:[%s1664_s16 + $0x3c] sm:$0xff]   ;;  %v1567_v20 = vld [vmem:[%s1664_s16 + $0x44] ss:$0 sps:$4 sm:$0x11]   ;;  %v379_v21 = vshrl.u32 %v1671_v2, 16 }
  0x15   : > { %675 = vrot.lane.b32.xlu1 %v624_v14, %s1621_s17  ;;  %v633_v17 = vsel %vm618_vm0, %v631_v12, %v632_v15  ;;  %v381_v22 = vshll.u32 %v1671_v2, 16  ;;  %v386_v23 = vshll.u32 %v1561_v5, 16  ;;  %v403_v24 = vshrl.u32 %v1680_v8, 16  ;;  %v1708_v34 = vld [vmem:[%s1664_s16 + $0x48] sm:$0xff]   ;;  %v1732_v62 = vld [vmem:[%s1664_s16 + $0x78] sm:$0xff]  }
  0x16   : > { %v405_v25 = vshll.u32 %v1680_v8, 16  ;;  %v630_v26 = vsel %vm618_vm0, %v628_v13, %v629_v18  ;;  %v634_v27 = vrot.slane %v1695_v19, 1  ;;  %v635_v28 = vrot.slane %v1567_v20, 1  ;;  %v1713_v39 = vld [vmem:[%s1664_s16 + $0x50] ss:$0 sps:$4 sm:$0x11]  }
  0x17   : > { %v410_v29 = vshll.u32 %v1565_v16, 16  ;;  %v383_v30 = vrot.slane %v381_v22, 1  ;;  %v388_v31 = vrot.slane %v386_v23, 1  ;;  %v391_v33 = vshrl.u32 %v1667_v0, 16  ;;  %v1723_v52 = vld [vmem:[%s1664_s16 + $0x6c] sm:$0xff]   ;;  %v1740_v10 = vld [vmem:[%s1664_s16 + $0x84] sm:$0xff]  }
  0x18   : > { %681 = vrot.lane.b32.xlu0 %v633_v17, %s1621_s17  ;;  %v407_v32 = vrot.slane %v405_v25, 1  ;;  %v636_v35 = vsel %vm618_vm0, %v634_v27, %v635_v28  ;;  %v393_v37 = vshll.u32 %v1667_v0, 16  ;;  %v398_v38 = vshll.u32 %v1559_v1, 16  ;;  %v1571_v53 = vld [vmem:[%s1664_s16 + $0x74] ss:$0 sps:$4 sm:$0x11]  }
  0x19   : > { %679 = vrot.lane.b32.xlu1 %v630_v26, %s1621_s17  ;;  %v412_v36 = vrot.slane %v410_v29, 1  ;;  %v384_v40 = vor.u32 %v383_v30, %v379_v21  ;;  %v427_v42 = vshrl.u32 %v1695_v19, 16  ;;  %v429_v43 = vshll.u32 %v1695_v19, 16  ;;  %v1573_v9 = vld [vmem:[%s1664_s16 + $0x80] ss:$0 sps:$4 sm:$0x11]  }
  0x1a   : > { %v408_v41 = vor.u32 %v407_v32, %v403_v24  ;;  %v395_v44 = vrot.slane %v393_v37, 1  ;;  %v400_v45 = vrot.slane %v398_v38, 1  ;;  %v434_v46 = vshll.u32 %v1567_v20, 16  ;;  %v1745_v15 = vld [vmem:[%s1664_s16 + $0x54] sm:$0xff]  }
  0x1b   : > { %v415_v47 = vshrl.u32 %v1676_v6, 16  ;;  %v389_v48 = vsel %vm365_vm1, %v384_v40, %v388_v31  ;;  %v431_v50 = vrot.slane %v429_v43, 1  ;;  %v417_v51 = vshll.u32 %v1676_v6, 16  ;;  %v1575_v25 = vld [vmem:[%s1664_s16 + $0x8c] ss:$0 sps:$4 sm:$0x11]  }
  0x1c   : > { %v413_v49 = vsel %vm365_vm1, %v408_v41, %v412_v36  ;;  %584 = vrot.lane.b32.xlu0 %v389_v48, %s1622_s18  ;;  %v396_v54 = vor.u32 %v395_v44, %v391_v33  ;;  %v436_v55 = vrot.slane %v434_v46, 1  ;;  %v422_v56 = vshll.u32 %v1684_v11, 16  ;;  %v1577_v37 = vld [vmem:[%s1664_s16 + $0x5c] ss:$0 sps:$4 sm:$0x11]   ;;  %v1765_v46 = vld [vmem:[%s1664_s16 + $0x90] sm:$0xff]  }
  0x1d   : > { %683 = vrot.lane.b32.xlu1 %v636_v35, %s1621_s17  ;;  %v439_v57 = vshrl.u32 %v1708_v34, 16  ;;  %v432_v58 = vor.u32 %v431_v50, %v427_v42  ;;  %v419_v59 = vrot.slane %v417_v51, 1  ;;  %v441_v60 = vshll.u32 %v1708_v34, 16  ;;  %v1769_v50 = vld [vmem:[%s1664_s16 + $0x60] sm:$0xff]  }
  0x1e   : > { %v446_v61 = vshll.u32 %v1713_v39, 16  ;;  %v401_v63 = vsel %vm365_vm1, %v396_v54, %v400_v45  ;;  %v424_v1 = vrot.slane %v422_v56, 1  ;;  %v475_v3 = vshrl.u32 %v1723_v52, 16  ;;  %v1778_v56 = vld [vmem:[%s1664_s16 + $0x9c] sm:$0xff]  }
  0x1f   : > { %v477_v4 = vshll.u32 %v1723_v52, 16  ;;  %v420_v5 = vor.u32 %v419_v59, %v415_v47  ;;  %v443_v7 = vrot.slane %v441_v60, 1  ;;  %v437_v11 = vsel %vm365_vm1, %v432_v58, %v436_v55  ;;  %v1775_v55 = vld [vmem:[%s1664_s16 + $0x98] ss:$0 sps:$4 sm:$0x11]  }
  0x20   : > { %586 = vrot.lane.b32.xlu0 %v401_v63, %s1622_s18  ;;  %v448_v12 = vrot.slane %v446_v61, 1  ;;  %v482_v14 = vshll.u32 %v1571_v53, 16  ;;  %v487_v18 = vshrl.u32 %v1732_v62, 16  ;;  %v489_v20 = vshll.u32 %v1732_v62, 16 }
  0x21   : > { %588 = vrot.lane.b32.xlu1 %v413_v49, %s1622_s18  ;;  %v479_v13 = vrot.slane %v477_v4, 1  ;;  %v425_v16 = vsel %vm365_vm1, %v420_v5, %v424_v1  ;;  %v444_v17 = vor.u32 %v443_v7, %v439_v57  ;;  %v646_v23 = vrot.slane %v1723_v52, 1  ;;  %v1581_v61 = vld [vmem:[%s1664_s16 + $0x68] ss:$0 sps:$4 sm:$0x11]  }
  0x22   : > { %v484_v22 = vrot.slane %v482_v14, 1  ;;  %v494_v24 = vshll.u32 %v1573_v9, 16  ;;  %v647_v26 = vrot.slane %v1571_v53, 1  ;;  %v491_v27 = vrot.slane %v489_v20, 1 }
  0x23   : > { %v480_v21 = vor.u32 %v479_v13, %v475_v3  ;;  %v499_v28 = vshrl.u32 %v1740_v10, 16  ;;  %v501_v29 = vshll.u32 %v1740_v10, 16  ;;  %v449_v30 = vsel %vm365_vm1, %v444_v17, %v448_v12  ;;  %v1583_v17 = vld [vmem:[%s1664_s16 + $0xa4] ss:$0 sps:$4 sm:$0x11]  }
  0x24   : > { %590 = vrot.lane.b32.xlu0 %v425_v16, %s1622_s18  ;;  %v496_v32 = vrot.slane %v494_v24, 1  ;;  %v506_v33 = vshll.u32 %v1575_v25, 16  ;;  %v492_v35 = vor.u32 %v491_v27, %v487_v18  ;;  %v451_v38 = vshrl.u32 %v1745_v15, 16 }
  0x25   : > { %592 = vrot.lane.b32.xlu1 %v437_v11, %s1622_s18  ;;  %v485_v31 = vsel %vm365_vm1, %v480_v21, %v484_v22  ;;  %v503_v36 = vrot.slane %v501_v29, 1  ;;  %v453_v40 = vshll.u32 %v1745_v15, 16  ;;  %v458_v42 = vshll.u32 %v1577_v37, 16  ;;  %v1801_v21 = vld [vmem:[%s1664_s16 + $0xb4] sm:$0xff]  }
  0x26   : > { %v648_v43 = vsel %vm618_vm0, %v646_v23, %v647_v26  ;;  %v508_v45 = vrot.slane %v506_v33, 1  ;;  %v497_v47 = vsel %vm365_vm1, %v492_v35, %v496_v32  ;;  %v649_v51 = vrot.slane %v1732_v62, 1  ;;  %v1587_v33 = vld [vmem:[%s1664_s16 + $0xbc] ss:$0 sps:$4 sm:$0x11]  }
  0x27   : > { %v455_v41 = vrot.slane %v453_v40, 1  ;;  %v504_v44 = vor.u32 %v503_v36, %v499_v28  ;;  %v460_v49 = vrot.slane %v458_v42, 1  ;;  %v650_v53 = vrot.slane %v1573_v9, 1 }
  0x28   : > { %600 = vrot.lane.b32.xlu0 %v485_v31, %s1622_s18  ;;  %v637_v54 = vrot.slane %v1708_v34, 1  ;;  %v638_v58 = vrot.slane %v1713_v39, 1  ;;  %v513_v59 = vshll.u32 %v1765_v46, 16  ;;  %v465_v63 = vshll.u32 %v1769_v50, 16 }
  0x29   : > { %594 = vrot.lane.b32.xlu1 %v449_v30, %s1622_s18  ;;  %v456_v48 = vor.u32 %v455_v41, %v451_v38  ;;  %v509_v57 = vsel %vm365_vm1, %v504_v44, %v508_v45  ;;  %v652_v1 = vrot.slane %v1740_v10, 1  ;;  %v653_v3 = vrot.slane %v1575_v25, 1  ;;  %v1807_v30 = vld [vmem:[%s1664_s16 + $0xa8] sm:$0xff]   ;;  %v1585_v41 = vld [vmem:[%s1664_s16 + $0xb0] ss:$0 sps:$4 sm:$0x11]  }
  0x2a   : > { %v651_v4 = vsel %vm618_vm0, %v649_v51, %v650_v53  ;;  %v640_v5 = vrot.slane %v1745_v15, 1  ;;  %v641_v7 = vrot.slane %v1577_v37, 1  ;;  %v511_v39 = vshrl.u32 %v1765_v46, 16  ;;  %v1827_v51 = vld [vmem:[%s1664_s16] sm:$0xff]  }
  0x2b   : > { %v461_v60 = vsel %vm365_vm1, %v456_v48, %v460_v49  ;;  %v515_v9 = vrot.slane %v513_v59, 1  ;;  %v518_v11 = vshll.u32 %v1775_v55, 16  ;;  %v463_v12 = vshrl.u32 %v1769_v50, 16  ;;  %v1824_v49 = vld [vmem:[%s1664_s16 + $0xc0] sm:$0xff]   ;;  %v1833_v59 = vld [vmem:[%s1664_s16 + $0xcc] sm:$0xff]  }
  0x2c   : > { %602 = vrot.lane.b32.xlu0 %v497_v47, %s1622_s18  ;;  %v639_v13 = vsel %vm618_vm0, %v637_v54, %v638_v58  ;;  %v467_v14 = vrot.slane %v465_v63, 1  ;;  %v470_v16 = vshll.u32 %v1581_v61, 16  ;;  %v525_v18 = vshll.u32 %v1778_v56, 16  ;;  %v1593_v63 = vld [vmem:[%s1664_s16 + $0x8] ss:$0 sps:$4 sm:$0x11]  }
  0x2d   : > { %691 = vrot.lane.b32.xlu1 %v648_v43, %s1621_s17  ;;  %v654_v20 = vsel %vm618_vm0, %v652_v1, %v653_v3  ;;  %v642_v22 = vsel %vm618_vm0, %v640_v5, %v641_v7  ;;  %v516_v23 = vor.u32 %v515_v9, %v511_v39  ;;  %v520_v24 = vrot.slane %v518_v11, 1  ;;  %v1591_v9 = vld [vmem:[%s1664_s16 + $0xd4] ss:$0 sps:$4 sm:$0x11]  }
  0x2e   : > { %v523_v25 = vshrl.u32 %v1778_v56, 16  ;;  %v468_v26 = vor.u32 %v467_v14, %v463_v12  ;;  %v472_v27 = vrot.slane %v470_v16, 1  ;;  %v527_v28 = vrot.slane %v525_v18, 1  ;;  %v1589_v14 = vld [vmem:[%s1664_s16 + $0xc8] ss:$0 sps:$4 sm:$0x11]  }
  0x2f   : > { %v530_v29 = vshll.u32 %v1583_v17, 16  ;;  %v643_v31 = vrot.slane %v1769_v50, 1  ;;  %v644_v32 = vrot.slane %v1581_v61, 1  ;;  %v549_v35 = vshll.u32 %v1801_v21, 16 }
  0x30   : > { %596 = vrot.lane.b32.xlu0 %v461_v60, %s1622_s18  ;;  %v521_v36 = vsel %vm365_vm1, %v516_v23, %v520_v24  ;;  %v473_v37 = vsel %vm365_vm1, %v468_v26, %v472_v27  ;;  %v528_v38 = vor.u32 %v527_v28, %v523_v25  ;;  %v537_v42 = vshll.u32 %v1807_v30, 16 }
  0x31   : > { %604 = vrot.lane.b32.xlu1 %v509_v57, %s1622_s18  ;;  %v532_v40 = vrot.slane %v530_v29, 1  ;;  %v658_v43 = vrot.slane %v1778_v56, 1  ;;  %v659_v44 = vrot.slane %v1583_v17, 1  ;;  %v655_v45 = vrot.slane %v1765_v46, 1 }
  0x32   : > { %v656_v47 = vrot.slane %v1775_v55, 1  ;;  %v535_v48 = vshrl.u32 %v1807_v30, 16  ;;  %v645_v53 = vsel %vm618_vm0, %v643_v31, %v644_v32  ;;  %v547_v54 = vshrl.u32 %v1801_v21, 16 }
  0x33   : > { %v551_v57 = vrot.slane %v549_v35, 1  ;;  %v554_v58 = vshll.u32 %v1587_v33, 16  ;;  %v533_v60 = vsel %vm365_vm1, %v528_v38, %v532_v40  ;;  %v539_v55 = vrot.slane %v537_v42, 1 }
  0x34   : > { %685 = vrot.lane.b32.xlu0 %v639_v13, %s1621_s17  ;;  %v542_v61 = vshll.u32 %v1585_v41, 16  ;;  %v619_v1 = vrot.slane %v1827_v51, 1  ;;  %v660_v3 = vsel %vm618_vm0, %v658_v43, %v659_v44  ;;  %v657_v5 = vsel %vm618_vm0, %v655_v45, %v656_v47 }
  0x35   : > { %693 = vrot.lane.b32.xlu1 %v651_v4, %s1621_s17  ;;  %v620_v4 = vrot.slane %v1593_v63, 1  ;;  %v552_v7 = vor.u32 %v551_v57, %v547_v54  ;;  %v556_v39 = vrot.slane %v554_v58, 1  ;;  %v573_v11 = vshll.u32 %v1833_v59, 16 }
  0x36   : > { %v540_v12 = vor.u32 %v539_v55, %v535_v48  ;;  %v544_v13 = vrot.slane %v542_v61, 1  ;;  %v561_v16 = vshll.u32 %v1824_v49, 16  ;;  %v661_v18 = vrot.slane %v1807_v30, 1 }
  0x37   : > { %v621_v17 = vsel %vm618_vm0, %v619_v1, %v620_v4  ;;  %v665_v23 = vrot.slane %v1587_v33, 1  ;;  %v557_v24 = vsel %vm365_vm1, %v552_v7, %v556_v39  ;;  %v571_v25 = vshrl.u32 %v1833_v59, 16  ;;  %v1594_v1 = vld [vmem:[%s2175_s1 + $0x10] ss:$0 sps:$4 sm:$0x33]   ;;  %v1596_v39 = vld [vmem:[%s2175_s1] sm:$0xff]  }
  0x38   : > { %687 = vrot.lane.b32.xlu0 %v642_v22, %s1621_s17  ;;  %v664_v22 = vrot.slane %v1801_v21, 1  ;;  %v575_v26 = vrot.slane %v573_v11, 1  ;;  %v578_v27 = vshll.u32 %v1591_v9, 16  ;;  %v545_v28 = vsel %vm365_vm1, %v540_v12, %v544_v13  ;;  %1527 = vmatprep.subr.msk.bf16.mxu0 %vm983_vm2, %v1594_v1 }
  0x39   : > { %695 = vrot.lane.b32.xlu1 %v654_v20, %s1621_s17  ;;  %v662_v20 = vrot.slane %v1585_v41, 1  ;;  %v559_v29 = vshrl.u32 %v1824_v49, 16  ;;  %v563_v31 = vrot.slane %v561_v16, 1  ;;  %v566_v32 = vshll.u32 %v1589_v14, 16  ;;  %1528 = vmatprep.subr.msk.bf16.mxu1 %vm983_vm2, %v1594_v1 }
  0x3a   : > { %v666_v33 = vsel %vm618_vm0, %v664_v22, %v665_v23  ;;  %v576_v35 = vor.u32 %v575_v26, %v571_v25  ;;  %v369_v41 = vshll.u32 %v1827_v51, 16  ;;  %v667_v42 = vrot.slane %v1824_v49, 1 }
  0x3b   : > { %v564_v38 = vor.u32 %v563_v31, %v559_v29  ;;  %v568_v40 = vrot.slane %v566_v32, 1  ;;  %v668_v44 = vrot.slane %v1589_v14, 1  ;;  %v670_v45 = vrot.slane %v1833_v59, 1 }
  0x3c   : > { %598 = vrot.lane.b32.xlu0 %v473_v37, %s1622_s18  ;;  %v663_v37 = vsel %vm618_vm0, %v661_v18, %v662_v20  ;;  %v671_v47 = vrot.slane %v1591_v9, 1  ;;  %v371_v54 = vrot.slane %v369_v41, 1  ;;  %v374_v57 = vshll.u32 %v1593_v63, 16 }
  0x3d   : > { %606 = vrot.lane.b32.xlu1 %v521_v36, %s1622_s18  ;;  %v580_v36 = vrot.slane %v578_v27, 1  ;;  %v569_v48 = vsel %vm365_vm1, %v564_v38, %v568_v40 }
  0x3e   : > { %v672_v58 = vsel %vm618_vm0, %v670_v45, %v671_v47  ;;  %v376_v61 = vrot.slane %v374_v57, 1 }
  0x3f   : > { %v581_v43 = vsel %vm365_vm1, %v576_v35, %v580_v36 }
  0x40   : > { %608 = vrot.lane.b32.xlu0 %v533_v60, %s1622_s18  ;;  %v669_v60 = vsel %vm618_vm0, %v667_v42, %v668_v44 }
  0x41   : > { %689 = vrot.lane.b32.xlu1 %v645_v53, %s1621_s17  ;;  %v367_v53 = vshrl.u32 %v1827_v51, 16 }
  0x43   : > { %v372_v55 = vor.u32 %v371_v54, %v367_v53 }
  0x44   : > { %697 = vrot.lane.b32.xlu0 %v657_v5, %s1621_s17  ;;  %v1595_v5 = vld [vmem:[%s2175_s1 + $0x8] sm:$0xff]  }
  0x45   : > { %699 = vrot.lane.b32.xlu1 %v660_v3, %s1621_s17  ;;  %v985_v3 = vsel %vm983_vm2, %v1594_v1, 0  ;;  %v377_v63 = vsel %vm365_vm1, %v372_v55, %v376_v61 }
  0x46   : > { %1484 = vmatpush3.bf16.msra.mxu0 %v985_v3  ;;  %1524 = vmatpush3.bf16.msra.mxu1 %v985_v3 }
  0x47   : > { %1485 = vmatprep.subr.bf16.mxu0 %v1595_v5  ;;  %1522 = vmatprep.subr.bf16.mxu1 %v1595_v5 }
  0x48   : > { %610 = vrot.lane.b32.xlu0 %v545_v28, %s1622_s18 }
  0x49   : > { %612 = vrot.lane.b32.xlu1 %v557_v24, %s1622_s18 }
  0x4a   : > { %1486 = vmatpush3.bf16.msra.mxu0 %v1595_v5  ;;  %1525 = vmatpush3.bf16.msra.mxu1 %v1595_v5 }
  0x4b   : > { %1487 = vmatprep.subr.bf16.mxu0 %v1596_v39  ;;  %1523 = vmatprep.subr.bf16.mxu1 %v1596_v39 }
  0x4c   : > { %701 = vrot.lane.b32.xlu0 %v663_v37, %s1621_s17 }
  0x4d   : > { %703 = vrot.lane.b32.xlu1 %v666_v33, %s1621_s17 }
  0x4e   : > { %1488 = vmatpush3.bf16.msra.mxu0 %v1596_v39  ;;  %1526 = vmatpush3.bf16.msra.mxu1 %v1596_v39 }
  0x50   : > { %614 = vrot.lane.b32.xlu0 %v569_v48, %s1622_s18 }
  0x51   : > { %616 = vrot.lane.b32.xlu1 %v581_v43, %s1622_s18 }
  0x54   : > { %705 = vrot.lane.b32.xlu0 %v669_v60, %s1621_s17 }
  0x55   : > { %707 = vrot.lane.b32.xlu1 %v672_v58, %s1621_s17 }
  0x58   : > { %582 = vrot.lane.b32.xlu0 %v377_v63, %s1622_s18 }
  0x59   : > { %673 = vrot.lane.b32.xlu1 %v621_v17, %s1621_s17 }
  0x86   : > { %v678_v4 = vpop.permute.xlu0 %677 }
  0x87   : > { %v676_v7 = vpop.permute.xlu1 %675 }
  0x8a   : > { %v682_v9 = vpop.permute.xlu0 %681 }
  0x8b   : > { %v680_v11 = vpop.permute.xlu1 %679 }
  0x8e   : > { %v585_v13 = vpop.permute.xlu0 %584 }
  0x8f   : > { %v684_v12 = vpop.permute.xlu1 %683  ;;  %v713_v14 = vsel %vm709_vm3, %v1671_v2, %v585_v13 }
  0x90   : > { %v1888_v16 = vsel %vm746_vm4, %v713_v14, %v676_v7 }
  0x91   : > { %799 = vrot.lane.b32.xlu0 %v1888_v16, %s1623_s25 }
  0x92   : > { %v587_v18 = vpop.permute.xlu0 %586 }
  0x93   : > { %v589_v17 = vpop.permute.xlu1 %588  ;;  %v715_v20 = vsel %vm709_vm3, %v1667_v0, %v587_v18 }
  0x94   : > { %v1895_v22 = vsel %vm746_vm4, %v715_v20, %v678_v4  ;;  %v717_v23 = vsel %vm709_vm3, %v1680_v8, %v589_v17 }
  0x95   : > { %801 = vrot.lane.b32.xlu1 %v1895_v22, %s1623_s25  ;;  %832 = vrot.lane.b32.xlu0 %v1895_v22, %s1624_s26  ;;  %v1904_v25 = vsel %vm746_vm4, %v717_v23, %v680_v11 }
  0x96   : > { %v591_v24 = vpop.permute.xlu0 %590 }
  0x97   : > { %v593_v2 = vpop.permute.xlu1 %592  ;;  %v719_v0 = vsel %vm709_vm3, %v1676_v6, %v591_v24 }
  0x98   : > { %v1913_v27 = vsel %vm746_vm4, %v719_v0, %v682_v9  ;;  %v721_v28 = vsel %vm709_vm3, %v1695_v19, %v593_v2 }
  0x99   : > { %834 = vrot.lane.b32.xlu1 %v1904_v25, %s1624_s26  ;;  %803 = vrot.lane.b32.xlu0 %v1904_v25, %s1623_s25  ;;  %v1922_v31 = vsel %vm746_vm4, %v721_v28, %v684_v12 }
  0x9a   : > { %v601_v26 = vpop.permute.xlu0 %600 }
  0x9b   : > { %v595_v8 = vpop.permute.xlu1 %594  ;;  %v729_v19 = vsel %vm709_vm3, %v1723_v52, %v601_v26 }
  0x9c   : > { %v723_v38 = vsel %vm709_vm3, %v1708_v34, %v595_v8 }
  0x9d   : > { %805 = vrot.lane.b32.xlu1 %v1913_v27, %s1623_s25  ;;  %836 = vrot.lane.b32.xlu0 %v1913_v27, %s1624_s26 }
  0x9e   : > { %v603_v29 = vpop.permute.xlu0 %602 }
  0x9f   : > { %v692_v6 = vpop.permute.xlu1 %691  ;;  %v731_v36 = vsel %vm709_vm3, %v1732_v62, %v603_v29 }
  0xa0   : > { %v1931_v35 = vsel %vm746_vm4, %v729_v19, %v692_v6 }
  0xa1   : > { %838 = vrot.lane.b32.xlu1 %v1922_v31, %s1624_s26  ;;  %807 = vrot.lane.b32.xlu0 %v1922_v31, %s1623_s25 }
  0xa2   : > { %v597_v33 = vpop.permute.xlu0 %596 }
  0xa3   : > { %v605_v32 = vpop.permute.xlu1 %604  ;;  %v725_v43 = vsel %vm709_vm3, %v1745_v15, %v597_v33 }
  0xa4   : > { %v733_v45 = vsel %vm709_vm3, %v1740_v10, %v605_v32 }
  0xa5   : > { %815 = vrot.lane.b32.xlu1 %v1931_v35, %s1623_s25 }
  0xa6   : > { %v686_v40 = vpop.permute.xlu0 %685 }
  0xa7   : > { %v694_v37 = vpop.permute.xlu1 %693  ;;  %v1943_v42 = vsel %vm746_vm4, %v723_v38, %v686_v40 }
  0xa8   : > { %v1940_v41 = vsel %vm746_vm4, %v731_v36, %v694_v37  ;;  %809 = vrot.lane.b32.xlu0 %v1943_v42, %s1623_s25 }
  0xa9   : > { %817 = vrot.lane.b32.xlu1 %v1940_v41, %s1623_s25 }
  0xaa   : > { %v688_v62 = vpop.permute.xlu0 %687 }
  0xab   : > { %v696_v52 = vpop.permute.xlu1 %695  ;;  %v1958_v47 = vsel %vm746_vm4, %v725_v43, %v688_v62 }
  0xac   : > { %840 = vrot.lane.b32.xlu0 %v1943_v42, %s1624_s26  ;;  %v1963_v48 = vsel %vm746_vm4, %v733_v45, %v696_v52 }
  0xad   : > { %848 = vrot.lane.b32.xlu1 %v1940_v41, %s1624_s26 }
  0xae   : > { %v599_v44 = vpop.permute.xlu0 %598 }
  0xaf   : > { %v607_v34 = vpop.permute.xlu1 %606  ;;  %v727_v57 = vsel %vm709_vm3, %v1769_v50, %v599_v44 }
  0xb0   : > { %842 = vrot.lane.b32.xlu0 %v1958_v47, %s1624_s26  ;;  %v735_v15 = vsel %vm709_vm3, %v1765_v46, %v607_v34 }
  0xb1   : > { %850 = vrot.lane.b32.xlu1 %v1963_v48, %s1624_s26 }
  0xb2   : > { %v609_v54 = vpop.permute.xlu0 %608 }
  0xb3   : > { %v690_v53 = vpop.permute.xlu1 %689  ;;  %v737_v3 = vsel %vm709_vm3, %v1778_v56, %v609_v54 }
  0xb4   : > { %811 = vrot.lane.b32.xlu0 %v1958_v47, %s1623_s25  ;;  %v1976_v60 = vsel %vm746_vm4, %v727_v57, %v690_v53 }
  0xb5   : > { %819 = vrot.lane.b32.xlu1 %v1963_v48, %s1623_s25 }
  0xb6   : > { %v698_v58 = vpop.permute.xlu0 %697 }
  0xb7   : > { %v700_v10 = vpop.permute.xlu1 %699  ;;  %v1979_v55 = vsel %vm746_vm4, %v735_v15, %v698_v58 }
  0xb8   : > { %813 = vrot.lane.b32.xlu0 %v1976_v60, %s1623_s25  ;;  %v1994_v63 = vsel %vm746_vm4, %v737_v3, %v700_v10 }
  0xb9   : > { %821 = vrot.lane.b32.xlu1 %v1979_v55, %s1623_s25 }
  0xba   : > { %v611_v1 = vpop.permute.xlu0 %610 }
  0xbb   : > { %v613_v61 = vpop.permute.xlu1 %612  ;;  %v739_v4 = vsel %vm709_vm3, %v1807_v30, %v611_v1 }
  0xbc   : > { %844 = vrot.lane.b32.xlu0 %v1976_v60, %s1624_s26  ;;  %v741_v9 = vsel %vm709_vm3, %v1801_v21, %v613_v61 }
  0xbd   : > { %852 = vrot.lane.b32.xlu1 %v1979_v55, %s1624_s26 }
  0xbe   : > { %v702_v50 = vpop.permute.xlu0 %701 }
  0xbf   : > { %v704_v46 = vpop.permute.xlu1 %703  ;;  %v2005_v56 = vsel %vm746_vm4, %v739_v4, %v702_v50 }
  0xc0   : > { %846 = vrot.lane.b32.xlu0 %v1931_v35, %s1624_s26 }
  0xc1   : > { %854 = vrot.lane.b32.xlu1 %v1994_v63, %s1624_s26 }
  0xc2   : > { %v615_v7 = vpop.permute.xlu0 %614 }
  0xc3   : > { %v617_v5 = vpop.permute.xlu1 %616  ;;  %v743_v13 = vsel %vm709_vm3, %v1824_v49, %v615_v7 }
  0xc4   : > { %v745_v39 = vsel %vm709_vm3, %v1833_v59, %v617_v5  ;;  %823 = vrot.lane.b32.xlu0 %v1994_v63, %s1623_s25  ;;  %v2015_v59 = vsel %vm746_vm4, %v741_v9, %v704_v46 }
  0xc5   : > { %825 = vrot.lane.b32.xlu1 %v2005_v56, %s1623_s25 }
  0xc6   : > { %v706_v11 = vpop.permute.xlu0 %705 }
  0xc7   : > { %v708_v30 = vpop.permute.xlu1 %707  ;;  %v780_v18 = vsel %vm746_vm4, %v743_v13, %v706_v11 }
  0xc8   : > { %v782_v12 = vsel %vm746_vm4, %v745_v39, %v708_v30  ;;  %856 = vrot.lane.b32.xlu0 %v2005_v56, %s1624_s26 }
  0xc9   : > { %858 = vrot.lane.b32.xlu1 %v2015_v59, %s1624_s26 }
  0xca   : > { %v583_v14 = vpop.permute.xlu0 %582 }
  0xcb   : > { %v674_v21 = vpop.permute.xlu1 %673  ;;  %v711_v17 = vsel %vm709_vm3, %v1827_v51, %v583_v14 }
  0xcc   : > { %827 = vrot.lane.b32.xlu0 %v2015_v59, %s1623_s25  ;;  %v748_v20 = vsel %vm746_vm4, %v711_v17, %v674_v21 }
  0xcd   : > { %829 = vrot.lane.b32.xlu1 %v780_v18, %s1623_s25 }
  0xd0   : > { %860 = vrot.lane.b32.xlu0 %v780_v18, %s1624_s26 }
  0xd1   : > { %862 = vrot.lane.b32.xlu1 %v782_v12, %s1624_s26 }
 0x103   : > { %v800_v49 = vpop.permute.xlu0 %799 }
 0x104   : > { %v866_v23 = vsel %vm864_vm5, %v748_v20, %v800_v49 }
 0x107   : > { %v802_v51 = vpop.permute.xlu1 %801  ;;  %v833_v2 = vpop.permute.xlu0 %832 }
 0x108   : > { %v899_v24 = vsel %vm897_vm6, %v866_v23, %v833_v2  ;;  %v868_v0 = vsel %vm864_vm5, %v1888_v16, %v802_v51 }
 0x109   : > { %1489 = vmatprep.mubr.msk.bf16.mxu0 %vm950_vm7, %v899_v24 }
 0x10b   : > { %v835_v8 = vpop.permute.xlu1 %834  ;;  %v804_v26 = vpop.permute.xlu0 %803 }
 0x10c   : > { %v901_v28 = vsel %vm897_vm6, %v868_v0, %v835_v8  ;;  %v870_v6 = vsel %vm864_vm5, %v1895_v22, %v804_v26 }
 0x10d   : > { %1490 = vmatmul.mubr.msk.bf16.vlgmr.msra.gmra.mxu0 %vm950_vm7, %v901_v28 }
 0x10f   : > { %v806_v29 = vpop.permute.xlu1 %805  ;;  %v837_v32 = vpop.permute.xlu0 %836 }
 0x110   : > { %v903_v33 = vsel %vm897_vm6, %v870_v6, %v837_v32  ;;  %v872_v19 = vsel %vm864_vm5, %v1904_v25, %v806_v29 }
 0x111   : > { %1493 = vmatprep.mubr.msk.bf16.mxu0 %vm950_vm7, %v903_v33 }
 0x113   : > { %v839_v36 = vpop.permute.xlu1 %838  ;;  %v808_v37 = vpop.permute.xlu0 %807 }
 0x114   : > { %v905_v16 = vsel %vm897_vm6, %v872_v19, %v839_v36  ;;  %v874_v22 = vsel %vm864_vm5, %v1913_v27, %v808_v37 }
 0x115   : > { %1494 = vmatmul.mubr.msk.bf16.gmra.mxu0 %vm950_vm7, %v905_v16 }
 0x117   : > { %v816_v38 = vpop.permute.xlu1 %815 }
 0x118   : > { %v882_v34 = vsel %vm864_vm5, %v1976_v60, %v816_v38 }
 0x11a   : > { %v810_v40 = vpop.permute.xlu0 %809 }
 0x11b   : > { %v818_v52 = vpop.permute.xlu1 %817  ;;  %v876_v45 = vsel %vm864_vm5, %v1922_v31, %v810_v40 }
 0x11c   : > { %v884_v27 = vsel %vm864_vm5, %v1931_v35, %v818_v52 }
 0x11e   : > { %v841_v62 = vpop.permute.xlu0 %840 }
 0x11f   : > { %v907_v43 = vsel %vm897_vm6, %v874_v22, %v841_v62  ;;  %v849_v44 = vpop.permute.xlu1 %848 }
 0x120   : > { %1497 = vmatprep.mubr.msk.bf16.mxu0 %vm950_vm7, %v907_v43  ;;  %v915_v25 = vsel %vm897_vm6, %v882_v34, %v849_v44 }
 0x121   : > { %1505 = vmatprep.mubr.msk.bf16.mxu1 %vm950_vm7, %v915_v25 }
 0x122   : > { %v843_v53 = vpop.permute.xlu0 %842 }
 0x123   : > { %v909_v54 = vsel %vm897_vm6, %v876_v45, %v843_v53  ;;  %v851_v10 = vpop.permute.xlu1 %850 }
 0x124   : > { %v917_v15 = vsel %vm897_vm6, %v884_v27, %v851_v10  ;;  %1498 = vmatmul.mubr.msk.bf16.gmra.mxu0 %vm950_vm7, %v909_v54 }
 0x125   : > { %1506 = vmatmul.mubr.msk.bf16.vlgmr.msra.gmra.mxu1 %vm950_vm7, %v917_v15 }
 0x126   : > { %v812_v57 = vpop.permute.xlu0 %811 }
 0x127   : > { %v820_v58 = vpop.permute.xlu1 %819  ;;  %v878_v31 = vsel %vm864_vm5, %v1943_v42, %v812_v57 }
 0x128   : > { %v886_v35 = vsel %vm864_vm5, %v1940_v41, %v820_v58 }
 0x12a   : > { %v814_v60 = vpop.permute.xlu0 %813 }
 0x12b   : > { %v822_v61 = vpop.permute.xlu1 %821  ;;  %v880_v4 = vsel %vm864_vm5, %v1958_v47, %v814_v60 }
 0x12c   : > { %v888_v42 = vsel %vm864_vm5, %v1963_v48, %v822_v61 }
 0x12e   : > { %v845_v1 = vpop.permute.xlu0 %844 }
 0x12f   : > { %v911_v46 = vsel %vm897_vm6, %v878_v31, %v845_v1  ;;  %v853_v50 = vpop.permute.xlu1 %852 }
 0x130   : > { %v919_v3 = vsel %vm897_vm6, %v886_v35, %v853_v50  ;;  %1501 = vmatprep.mubr.msk.bf16.mxu0 %vm950_vm7, %v911_v46 }
 0x131   : > { %1509 = vmatprep.mubr.msk.bf16.mxu1 %vm950_vm7, %v919_v3 }
 0x132   : > { %v847_v5 = vpop.permute.xlu0 %846 }
 0x133   : > { %v913_v7 = vsel %vm897_vm6, %v880_v4, %v847_v5  ;;  %v855_v39 = vpop.permute.xlu1 %854 }
 0x134   : > { %v921_v41 = vsel %vm897_vm6, %v888_v42, %v855_v39  ;;  %1502 = vmatmul.mubr.msk.bf16.gmra.mxu0 %vm950_vm7, %v913_v7 }
 0x135   : > { %1510 = vmatmul.mubr.msk.bf16.gmra.mxu1 %vm950_vm7, %v921_v41 }
 0x136   : > { %v824_v9 = vpop.permute.xlu0 %823 }
 0x137   : > { %v826_v30 = vpop.permute.xlu1 %825  ;;  %v890_v11 = vsel %vm864_vm5, %v1979_v55, %v824_v9 }
 0x138   : > { %v892_v47 = vsel %vm864_vm5, %v1994_v63, %v826_v30 }
 0x13a   : > { %v857_v12 = vpop.permute.xlu0 %856 }
 0x13b   : > { %v923_v48 = vsel %vm897_vm6, %v890_v11, %v857_v12  ;;  %v859_v13 = vpop.permute.xlu1 %858 }
 0x13c   : > { %v925_v21 = vsel %vm897_vm6, %v892_v47, %v859_v13  ;;  %1513 = vmatprep.mubr.msk.bf16.mxu1 %vm950_vm7, %v923_v48 }
 0x13d   : > { %1514 = vmatmul.mubr.msk.bf16.gmra.mxu1 %vm950_vm7, %v925_v21 }
 0x13e   : > { %v828_v14 = vpop.permute.xlu0 %827 }
 0x13f   : > { %v830_v17 = vpop.permute.xlu1 %829  ;;  %v894_v18 = vsel %vm864_vm5, %v2005_v56, %v828_v14 }
 0x140   : > { %v896_v55 = vsel %vm864_vm5, %v2015_v59, %v830_v17 }
 0x142   : > { %v861_v20 = vpop.permute.xlu0 %860 }
 0x143   : > { %v927_v63 = vsel %vm897_vm6, %v894_v18, %v861_v20  ;;  %v863_v49 = vpop.permute.xlu1 %862 }
 0x144   : > { %v929_v23 = vsel %vm897_vm6, %v896_v55, %v863_v49  ;;  %1517 = vmatprep.mubr.msk.bf16.mxu1 %vm950_vm7, %v927_v63 }
 0x145   : > { %1518 = vmatmul.mubr.msk.bf16.gmra.mxu1 %vm950_vm7, %v929_v23 }
 0x1cd   : > { %v1491_v51 = vpop.f32.mrf.mxu0 }
 0x1ce   : > { %v1222_v59 = vmul.f32 %v1491_v51, %v1491_v51  ;;  %v1150_v52 = vsel %vm1148_vm8, %v1491_v51, 0.0 }
 0x1cf   : > { %v1021_v2 = vpop.f32.mrf.mxu0 }
 0x1d0   : > { %v1220_v6 = vmul.f32 %v1021_v2, %v1021_v2  ;;  %v1149_v19 = vsel %vm1148_vm8, %v1021_v2, 0.0  ;;  %v1253_v34 = vsel %vm1148_vm8, %v1222_v59, 0.0 }
 0x1d1   : > { %v1492_v24 = vpop.f32.mrf.mxu0  ;;  %v1151_v43 = vadd.f32 %v1150_v52, %v1149_v19 }
 0x1d2   : > { %v1223_v36 = vmul.f32 %v1492_v24, %v1492_v24  ;;  %v1252_v38 = vsel %vm1148_vm8, %v1220_v6, 0.0  ;;  %v1181_v44 = vsel %vm1148_vm8, %v1492_v24, 0.0 }
 0x1d3   : > { %v1024_v0 = vpop.f32.mrf.mxu0  ;;  %v1254_v53 = vadd.f32 %v1253_v34, %v1252_v38 }
 0x1d4   : > { %v1221_v32 = vmul.f32 %v1024_v0, %v1024_v0  ;;  %v1180_v22 = vsel %vm1148_vm8, %v1024_v0, 0.0  ;;  %v1284_v27 = vsel %vm1148_vm8, %v1223_v36, 0.0 }
 0x1d5   : > { %v1495_v8 = vpop.f32.mrf.mxu0  ;;  %v1182_v57 = vadd.f32 %v1181_v44, %v1180_v22 }
 0x1d6   : > { %v1283_v25 = vsel %vm1148_vm8, %v1221_v32, 0.0  ;;  %v1226_v58 = vmul.f32 %v1495_v8, %v1495_v8  ;;  %v1154_v4 = vsel %vm1148_vm8, %v1495_v8, 0.0 }
 0x1d7   : > { %v1037_v26 = vpop.f32.mrf.mxu0  ;;  %v1285_v31 = vadd.f32 %v1284_v27, %v1283_v25 }
 0x1d8   : > { %v1224_v16 = vmul.f32 %v1037_v26, %v1037_v26  ;;  %v1152_v62 = vsel %vm1148_vm8, %v1037_v26, 0.0  ;;  %v1257_v39 = vsel %vm1148_vm8, %v1226_v58, 0.0 }
 0x1d9   : > { %v1496_v56 = vpop.f32.mrf.mxu0  ;;  %v1153_v60 = vadd.f32 %v1152_v62, %v1151_v43 }
 0x1da   : > { %v1255_v54 = vsel %vm1148_vm8, %v1224_v16, 0.0  ;;  %v1227_v1 = vmul.f32 %v1496_v56, %v1496_v56  ;;  %v1185_v41 = vsel %vm1148_vm8, %v1496_v56, 0.0 }
 0x1db   : > { %v1040_v28 = vpop.f32.mrf.mxu0  ;;  %v1256_v46 = vadd.f32 %v1255_v54, %v1254_v53  ;;  %v1155_v30 = vadd.f32 %v1154_v4, %v1153_v60 }
 0x1dc   : > { %v1225_v40 = vmul.f32 %v1040_v28, %v1040_v28  ;;  %v1183_v10 = vsel %vm1148_vm8, %v1040_v28, 0.0  ;;  %v1288_v11 = vsel %vm1148_vm8, %v1227_v1, 0.0 }
 0x1dd   : > { %v1184_v50 = vadd.f32 %v1183_v10, %v1182_v57  ;;  %v1258_v21 = vadd.f32 %v1257_v39, %v1256_v46 }
 0x1de   : > { %v1286_v61 = vsel %vm1148_vm8, %v1225_v40, 0.0 }
 0x1df   : > { %v1287_v5 = vadd.f32 %v1286_v61, %v1285_v31  ;;  %v1186_v17 = vadd.f32 %v1185_v41, %v1184_v50 }
 0x1e1   : > { %v1289_v63 = vadd.f32 %v1288_v11, %v1287_v5 }
 0x1e4   : > { %v1499_v29 = vpop.f32.mrf.mxu0 }
 0x1e5   : > { %v1507_v37 = vpop.f32.mrf.mxu1  ;;  %v1230_v9 = vmul.f32 %v1499_v29, %v1499_v29  ;;  %v1158_v18 = vsel %vm1148_vm8, %v1499_v29, 0.0 }
 0x1e6   : > { %v1053_v33 = vpop.f32.mrf.mxu0  ;;  %v1238_v12 = vmul.f32 %v1507_v37, %v1507_v37  ;;  %v1166_v51 = vsel %vm1148_vm8, %v1507_v37, 0.0 }
 0x1e7   : > { %v1085_v15 = vpop.f32.mrf.mxu1  ;;  %v1228_v35 = vmul.f32 %v1053_v33, %v1053_v33  ;;  %v1156_v42 = vsel %vm1148_vm8, %v1053_v33, 0.0  ;;  %v1261_v23 = vsel %vm1148_vm8, %v1230_v9, 0.0 }
 0x1e8   : > { %v1500_v45 = vpop.f32.mrf.mxu0  ;;  %v1157_v13 = vadd.f32 %v1156_v42, %v1155_v30  ;;  %v1236_v14 = vmul.f32 %v1085_v15, %v1085_v15  ;;  %v1269_v8 = vsel %vm1148_vm8, %v1238_v12, 0.0  ;;  %v1164_v26 = vsel %vm1148_vm8, %v1085_v15, 0.0 }
 0x1e9   : > { %v1508_v7 = vpop.f32.mrf.mxu1  ;;  %v1259_v47 = vsel %vm1148_vm8, %v1228_v35, 0.0  ;;  %v1231_v20 = vmul.f32 %v1500_v45, %v1500_v45  ;;  %v1189_v56 = vsel %vm1148_vm8, %v1500_v45, 0.0 }
 0x1ea   : > { %v1056_v3 = vpop.f32.mrf.mxu0  ;;  %v1260_v2 = vadd.f32 %v1259_v47, %v1258_v21  ;;  %v1239_v24 = vmul.f32 %v1508_v7, %v1508_v7  ;;  %v1267_v29 = vsel %vm1148_vm8, %v1236_v14, 0.0  ;;  %v1197_v59 = vsel %vm1148_vm8, %v1508_v7, 0.0 }
 0x1eb   : > { %v1229_v48 = vmul.f32 %v1056_v3, %v1056_v3  ;;  %v1187_v55 = vsel %vm1148_vm8, %v1056_v3, 0.0  ;;  %v1088_v49 = vpop.f32.mrf.mxu1  ;;  %v1159_v19 = vadd.f32 %v1158_v18, %v1157_v13  ;;  %v1292_v36 = vsel %vm1148_vm8, %v1231_v20, 0.0 }
 0x1ec   : > { %v1188_v32 = vadd.f32 %v1187_v55, %v1186_v17  ;;  %v1300_v52 = vsel %vm1148_vm8, %v1239_v24, 0.0  ;;  %v1262_v34 = vadd.f32 %v1261_v23, %v1260_v2  ;;  %v1195_v44 = vsel %vm1148_vm8, %v1088_v49, 0.0 }
 0x1ed   : > { %v1290_v28 = vsel %vm1148_vm8, %v1229_v48, 0.0  ;;  %v1237_v25 = vmul.f32 %v1088_v49, %v1088_v49 }
 0x1ee   : > { %v1291_v22 = vadd.f32 %v1290_v28, %v1289_v63  ;;  %v1190_v58 = vadd.f32 %v1189_v56, %v1188_v32 }
 0x1ef   : > { %v1298_v5 = vsel %vm1148_vm8, %v1237_v25, 0.0 }
 0x1f0   : > { %v1293_v4 = vadd.f32 %v1292_v36, %v1291_v22 }
 0x1f4   : > { %v1503_v0 = vpop.f32.mrf.mxu0 }
 0x1f5   : > { %v1511_v6 = vpop.f32.mrf.mxu1  ;;  %v1234_v16 = vmul.f32 %v1503_v0, %v1503_v0  ;;  %v1162_v45 = vsel %vm1148_vm8, %v1503_v0, 0.0 }
 0x1f6   : > { %v1069_v33 = vpop.f32.mrf.mxu0  ;;  %v1242_v54 = vmul.f32 %v1511_v6, %v1511_v6  ;;  %v1170_v47 = vsel %vm1148_vm8, %v1511_v6, 0.0 }
 0x1f7   : > { %v1160_v37 = vsel %vm1148_vm8, %v1069_v33, 0.0  ;;  %v1232_v38 = vmul.f32 %v1069_v33, %v1069_v33  ;;  %v1101_v40 = vpop.f32.mrf.mxu1  ;;  %v1265_v60 = vsel %vm1148_vm8, %v1234_v16, 0.0 }
 0x1f8   : > { %v1161_v62 = vadd.f32 %v1160_v37, %v1159_v19  ;;  %v1504_v43 = vpop.f32.mrf.mxu0  ;;  %v1240_v42 = vmul.f32 %v1101_v40, %v1101_v40  ;;  %v1273_v48 = vsel %vm1148_vm8, %v1242_v54, 0.0  ;;  %v1168_v13 = vsel %vm1148_vm8, %v1101_v40, 0.0 }
 0x1f9   : > { %v1263_v53 = vsel %vm1148_vm8, %v1232_v38, 0.0  ;;  %v1512_v27 = vpop.f32.mrf.mxu1  ;;  %v1235_v61 = vmul.f32 %v1504_v43, %v1504_v43  ;;  %v1193_v7 = vsel %vm1148_vm8, %v1504_v43, 0.0 }
 0x1fa   : > { %v1163_v10 = vadd.f32 %v1162_v45, %v1161_v62  ;;  %v1264_v15 = vadd.f32 %v1263_v53, %v1262_v34  ;;  %v1072_v57 = vpop.f32.mrf.mxu0  ;;  %v1271_v63 = vsel %vm1148_vm8, %v1240_v42, 0.0  ;;  %v1243_v49 = vmul.f32 %v1512_v27, %v1512_v27 }
 0x1fb   : > { %v1191_v31 = vsel %vm1148_vm8, %v1072_v57, 0.0  ;;  %v1233_v1 = vmul.f32 %v1072_v57, %v1072_v57  ;;  %v1104_v35 = vpop.f32.mrf.mxu1  ;;  %v1296_v21 = vsel %vm1148_vm8, %v1235_v61, 0.0  ;;  %v1201_v28 = vsel %vm1148_vm8, %v1512_v27, 0.0 }
 0x1fc   : > { %v1266_v46 = vadd.f32 %v1265_v60, %v1264_v15  ;;  %v1165_v50 = vadd.f32 %v1164_v26, %v1163_v10  ;;  %v1192_v3 = vadd.f32 %v1191_v31, %v1190_v58  ;;  %v1241_v23 = vmul.f32 %v1104_v35, %v1104_v35 }
 0x1fd   : > { %v1294_v39 = vsel %vm1148_vm8, %v1233_v1, 0.0  ;;  %v1515_v41 = vpop.f32.mrf.mxu1  ;;  %v1199_v6 = vsel %vm1148_vm8, %v1104_v35, 0.0  ;;  %v1304_v37 = vsel %vm1148_vm8, %v1243_v49, 0.0 }
 0x1fe   : > { %v1167_v9 = vadd.f32 %v1166_v51, %v1165_v50  ;;  %v1268_v30 = vadd.f32 %v1267_v29, %v1266_v46  ;;  %v1194_v11 = vadd.f32 %v1193_v7, %v1192_v3  ;;  %v1295_v12 = vadd.f32 %v1294_v39, %v1293_v4 }
 0x1ff   : > { %v1117_v14 = vpop.f32.mrf.mxu1  ;;  %v1246_v29 = vmul.f32 %v1515_v41, %v1515_v41  ;;  %v1302_v38 = vsel %vm1148_vm8, %v1241_v23, 0.0  ;;  %v1174_v34 = vsel %vm1148_vm8, %v1515_v41, 0.0 }
 0x200   : > { %v1169_v17 = vadd.f32 %v1168_v13, %v1167_v9  ;;  %v1270_v18 = vadd.f32 %v1269_v8, %v1268_v30  ;;  %v1196_v20 = vadd.f32 %v1195_v44, %v1194_v11  ;;  %v1297_v55 = vadd.f32 %v1296_v21, %v1295_v12 }
 0x201   : > { %v1244_v51 = vmul.f32 %v1117_v14, %v1117_v14  ;;  %v1516_v2 = vpop.f32.mrf.mxu1  ;;  %v1172_v32 = vsel %vm1148_vm8, %v1117_v14, 0.0  ;;  %v1277_v25 = vsel %vm1148_vm8, %v1246_v29, 0.0 }
 0x202   : > { %v1272_v24 = vadd.f32 %v1271_v63, %v1270_v18  ;;  %v1299_v0 = vadd.f32 %v1298_v5, %v1297_v55  ;;  %v1198_v26 = vadd.f32 %v1197_v59, %v1196_v20  ;;  %v1171_v56 = vadd.f32 %v1170_v47, %v1169_v17 }
 0x203   : > { %v1120_v8 = vpop.f32.mrf.mxu1  ;;  %v1275_v40 = vsel %vm1148_vm8, %v1244_v51, 0.0  ;;  %v1247_v45 = vmul.f32 %v1516_v2, %v1516_v2  ;;  %v1205_v1 = vsel %vm1148_vm8, %v1516_v2, 0.0 }
 0x204   : > { %v1200_v33 = vadd.f32 %v1199_v6, %v1198_v26  ;;  %v1301_v19 = vadd.f32 %v1300_v52, %v1299_v0  ;;  %v1173_v36 = vadd.f32 %v1172_v32, %v1171_v56  ;;  %v1274_v16 = vadd.f32 %v1273_v48, %v1272_v24 }
 0x205   : > { %v1245_v59 = vmul.f32 %v1120_v8, %v1120_v8  ;;  %v1519_v22 = vpop.f32.mrf.mxu1  ;;  %v1203_v52 = vsel %vm1148_vm8, %v1120_v8, 0.0  ;;  %v1308_v3 = vsel %vm1148_vm8, %v1247_v45, 0.0 }
 0x206   : > { %v1303_v62 = vadd.f32 %v1302_v38, %v1301_v19  ;;  %v1276_v43 = vadd.f32 %v1275_v40, %v1274_v16  ;;  %v1202_v44 = vadd.f32 %v1201_v28, %v1200_v33  ;;  %v1175_v27 = vadd.f32 %v1174_v34, %v1173_v36 }
 0x207   : > { %v1133_v53 = vpop.f32.mrf.mxu1  ;;  %v1306_v58 = vsel %vm1148_vm8, %v1245_v59, 0.0  ;;  %v1250_v46 = vmul.f32 %v1519_v22, %v1519_v22  ;;  %v1178_v4 = vsel %vm1148_vm8, %v1519_v22, 0.0 }
 0x208   : > { %v1204_v54 = vadd.f32 %v1203_v52, %v1202_v44  ;;  %v1305_v10 = vadd.f32 %v1304_v37, %v1303_v62  ;;  %v1176_v15 = vsel %vm1148_vm8, %v1133_v53, 0.0  ;;  %v1248_v57 = vmul.f32 %v1133_v53, %v1133_v53 }
 0x209   : > { %v1177_v60 = vadd.f32 %v1176_v15, %v1175_v27  ;;  %v1278_v61 = vadd.f32 %v1277_v25, %v1276_v43  ;;  %v1520_v31 = vpop.f32.mrf.mxu1  ;;  %v1281_v47 = vsel %vm1148_vm8, %v1250_v46, 0.0 }
 0x20a   : > { %v1307_v35 = vadd.f32 %v1306_v58, %v1305_v10  ;;  %v1279_v50 = vsel %vm1148_vm8, %v1248_v57, 0.0  ;;  %v1206_v7 = vadd.f32 %v1205_v1, %v1204_v54  ;;  %v1251_v39 = vmul.f32 %v1520_v31, %v1520_v31 }
 0x20b   : > { %v1280_v5 = vadd.f32 %v1279_v50, %v1278_v61  ;;  %v1136_v42 = vpop.f32.mrf.mxu1  ;;  %v1179_v11 = vadd.f32 %v1178_v4, %v1177_v60  ;;  %v1209_v48 = vsel %vm1148_vm8, %v1520_v31, 0.0 }
 0x20c   : > { %v1207_v41 = vsel %vm1148_vm8, %v1136_v42, 0.0  ;;  %v1249_v9 = vmul.f32 %v1136_v42, %v1136_v42  ;;  %v1309_v30 = vadd.f32 %v1308_v3, %v1307_v35  ;;  %v1312_v18 = vsel %vm1148_vm8, %v1251_v39, 0.0 }
 0x20d   : > { %v1208_v12 = vadd.f32 %v1207_v41, %v1206_v7  ;;  %v1282_v21 = vadd.f32 %v1281_v47, %v1280_v5  ;;  %v1211_v20 = vsel %vm1148_vm8, %v1179_v11, 0.0 }
 0x20e   : > { %v1310_v13 = vsel %vm1148_vm8, %v1249_v9, 0.0 }
 0x20f   : > { %v1210_v14 = vadd.f32 %v1209_v48, %v1208_v12  ;;  %v1311_v17 = vadd.f32 %v1310_v13, %v1309_v30  ;;  %v1314_v23 = vsel %vm1148_vm8, %v1282_v21, 0.0 }
 0x211   : > { %v1212_v55 = vsel %vm1148_vm8, %v1210_v14, 0.0  ;;  %v1313_v63 = vadd.f32 %v1312_v18, %v1311_v17 }
 0x212   : > { %v1213_v49 = vadd.f32 %v1212_v55, %v1211_v20 }
 0x213   : > { %v1315_v51 = vsel %vm1148_vm8, %v1313_v63, 0.0 }
 0x214   : > { %v1214_v2 = vrot.slane %v1213_v49, 4  ;;  %v1316_v24 = vadd.f32 %v1315_v51, %v1314_v23 }
 0x216   : > { %v1215_v0 = vadd.f32 %v1214_v2, %v1213_v49  ;;  %v1317_v26 = vrot.slane %v1316_v24, 4 }
 0x218   : > { %v1216_v56 = vrot.slane %v1215_v0, 2  ;;  %v1318_v28 = vadd.f32 %v1317_v26, %v1316_v24 }
 0x21a   : > { %v1217_v6 = vadd.f32 %v1216_v56, %v1215_v0  ;;  %v1319_v29 = vrot.slane %v1318_v28, 2 }
 0x21c   : > { %v1218_v32 = vrot.slane %v1217_v6, 1  ;;  %v1320_v8 = vadd.f32 %v1319_v29, %v1318_v28 }
 0x21e   : > { %v1321_v33 = vrot.slane %v1320_v8, 1  ;;  %v1219_v19 = vadd.f32 %v1218_v32, %v1217_v6 }
 0x220   : > { %v1322_v36 = vadd.f32 %v1321_v33, %v1320_v8 }
 0x222   : > { %v1324_v16 = vsel %vm1323_vm9, %v1219_v19, %v1322_v36 }
 0x223   : > { %1326 = vst.msk [vmem:[%s161_s30] sm:$0x3] %vm1325_vm10, %v1324_v16 }
 0x224 PF: > { %s12_s11 = sadd.s32 1, %s1619_s11   ;;  %s2177_s9 = smov %s1615_s10 }
 0x225   : > { %p9_p5 = scmp.ge.s32.totalorder %s12_s11, 4   ;;  %s2178_s10 = smov %s2180_s12 }
 0x227   :  { %11 = sbr.rel (!%p9_p5) target bundleno = 2 (0x2), region = 59 }

</bundles_post_ra>
